<compile_context>
chip_gen: v5e
topology: v5e:2x2
jax: 0.10.0
libtpu: 0.0.40
codegen_flags: <defaults>
</compile_context>

<pallas_src>
import functools

import jax
import jax.numpy as jnp
from jax.experimental import pallas as pl
from jax.experimental.pallas import tpu as pltpu

H_DIM = 400


def _disc_kernel(x_ref, w1_ref, b1_ref, w2_ref, b2_ref,
                 w3_ref, b3_ref, w4_ref, b4_ref, o_ref):
    x = x_ref[...]                                   # (TB, 2)  f32
    w1 = w1_ref[...]                                 # (2, H)   f32

    # Layer 1: K=2 would waste an MXU pass -> two VPU broadcast-FMAs instead.
    h = x[:, 0:1] * w1[0:1, :] + x[:, 1:2] * w1[1:2, :] + b1_ref[...]
    h = jnp.maximum(h, 0.0)                          # (TB, H)  f32

    # Layers 2/3: bf16 operands on the MXU, f32 accumulation, f32 epilogue.
    h = jnp.dot(h.astype(jnp.bfloat16), w2_ref[...],
                preferred_element_type=jnp.float32)  # (TB, H)
    h = jnp.maximum(h + b2_ref[...], 0.0)
    h = jnp.dot(h.astype(jnp.bfloat16), w3_ref[...],
                preferred_element_type=jnp.float32)  # (TB, H)
    h = jnp.maximum(h + b3_ref[...], 0.0)

    # Layer 4: N=1 would waste MXU output width -> VPU mul + lane reduction.
    logits = jnp.sum(h * w4_ref[...], axis=-1, keepdims=True) + b4_ref[...]
    o_ref[...] = jax.nn.sigmoid(logits)              # (TB, 1)


@functools.partial(jax.jit, static_argnames=("tb",))
def discriminator_forward(x, params, *, tb=1024):
    """x: (B, 2) float32 -> (B,) float32 (matches Discriminator.forward)."""
    w1, b1, w2, b2, w3, b3, w4, b4 = params
    B = x.shape[0]

    # Tile size: single tile for small batches, tb-row tiles otherwise.
    if B <= tb:
        tb_eff = max(8, ((B + 7) // 8) * 8)
    else:
        tb_eff = tb
    n_tiles = pl.cdiv(B, tb_eff)
    Bp = n_tiles * tb_eff
    if Bp != B:
        x = jnp.pad(x, ((0, Bp - B), (0, 0)))        # padded rows trimmed below

    # bf16 copies of the two big weight matrices (halves weight DMA, 2-4x MXU).
    w2b = w2.astype(jnp.bfloat16)
    w3b = w3.astype(jnp.bfloat16)
    w4row = w4.reshape(1, -1)                        # (1, H) for the VPU tail

    def const_spec(shape):
        # Full-array block, constant index map -> stays VMEM-resident across
        # the batch grid instead of being re-DMA'd per tile.
        return pl.BlockSpec(shape, lambda i: (0, 0))

    out = pl.pallas_call(
        _disc_kernel,
        out_shape=jax.ShapeDtypeStruct((Bp, 1), jnp.float32),
        grid=(n_tiles,),
        in_specs=[
            pl.BlockSpec((tb_eff, 2), lambda i: (i, 0)),   # x: batch-tiled
            const_spec(w1.shape), const_spec(b1.shape),
            const_spec(w2b.shape), const_spec(b2.shape),
            const_spec(w3b.shape), const_spec(b3.shape),
            const_spec(w4row.shape), const_spec(b4.shape),
        ],
        out_specs=pl.BlockSpec((tb_eff, 1), lambda i: (i, 0)),
        compiler_params=pltpu.CompilerParams(
            dimension_semantics=("parallel",),
            vmem_limit_bytes=48 * 1024 * 1024,
        ),
    )(x, w1, b1, w2b, b2, w3b, b3, w4row, b4)
    return out[:B, 0]                                # matches output.view(-1)


def init_params(key):
    """PyTorch nn.Linear default init (U[-1/sqrt(fan_in), +1/sqrt(fan_in)]).

    Weights stored as (in_features, out_features); biases as (1, out_features)."""
    dims = [(2, H_DIM), (H_DIM, H_DIM), (H_DIM, H_DIM), (H_DIM, 1)]
    params = []
    for (fan_in, fan_out) in dims:
        key, kw, kb = jax.random.split(key, 3)
        bound = 1.0 / jnp.sqrt(float(fan_in))
        w = jax.random.uniform(kw, (fan_in, fan_out), jnp.float32, -bound, bound)
        b = jax.random.uniform(kb, (1, fan_out), jnp.float32, -bound, bound)
        params.extend([w, b])
    return tuple(params)


def reference_forward(x, params):
    w1, b1, w2, b2, w3, b3, w4, b4 = params
    h = jnp.maximum(x @ w1 + b1, 0.0)
    h = jnp.maximum(h @ w2 + b2, 0.0)
    h = jnp.maximum(h @ w3 + b3, 0.0)
    return jax.nn.sigmoid(h @ w4 + b4).reshape(-1)


if __name__ == "__main__":
    key = jax.random.PRNGKey(0)
    kp, kx1, kx2 = jax.random.split(key, 3)
    params = init_params(kp)

    # Small batch (single tile path).
    B = 8
    x = jax.random.normal(kx1, (B, 2), jnp.float32)
    out = jax.block_until_ready(discriminator_forward(x, params))
    ref = reference_forward(x, params)
    assert out.shape == (B,), out.shape
    # bf16 matmul operands (f32 accumulation) -> loosen tolerance vs f32 ref.
    assert jnp.allclose(out, ref, atol=2e-2, rtol=0.0), (out, ref)

    # Larger, non-multiple batch (multi-tile grid + padding/trim path).
    B2 = 2500
    x2 = jax.random.normal(kx2, (B2, 2), jnp.float32)
    out2 = jax.block_until_ready(discriminator_forward(x2, params))
    ref2 = reference_forward(x2, params)
    assert out2.shape == (B2,), out2.shape
    assert jnp.allclose(out2, ref2, atol=2e-2, rtol=0.0)

    print("KERNEL_OK")
</pallas_src>

<mosaic_0001>
module attributes {stable_mosaic.version = 11 : i64} {
  func.func @_disc_kernel(%arg0: i32, %arg1: memref<8x2xf32, #tpu.memory_space<vmem>>, %arg2: memref<2x400xf32, #tpu.memory_space<vmem>>, %arg3: memref<1x400xf32, #tpu.memory_space<vmem>>, %arg4: memref<400x400xbf16, #tpu.memory_space<vmem>>, %arg5: memref<1x400xf32, #tpu.memory_space<vmem>>, %arg6: memref<400x400xbf16, #tpu.memory_space<vmem>>, %arg7: memref<1x400xf32, #tpu.memory_space<vmem>>, %arg8: memref<1x400xf32, #tpu.memory_space<vmem>>, %arg9: memref<1x1xf32, #tpu.memory_space<vmem>>, %arg10: memref<8x1xf32, #tpu.memory_space<vmem>>) attributes {dimension_semantics = [#tpu.dimension_semantics<parallel>], iteration_bounds = array<i64: 1>, scalar_prefetch = 0 : i64, scratch_operands = 0 : i64, tpu.core_type = #tpu.core_type<tc>, window_params = [{transform_indices = @transform_0, window_bounds = array<i64: 8, 2>}, {pipeline_mode = #tpu.pipeline_mode<synchronous>, transform_indices = @transform_1, window_bounds = array<i64: 2, 400>}, {pipeline_mode = #tpu.pipeline_mode<synchronous>, transform_indices = @transform_2, window_bounds = array<i64: 1, 400>}, {pipeline_mode = #tpu.pipeline_mode<synchronous>, transform_indices = @transform_3, window_bounds = array<i64: 400, 400>}, {pipeline_mode = #tpu.pipeline_mode<synchronous>, transform_indices = @transform_4, window_bounds = array<i64: 1, 400>}, {pipeline_mode = #tpu.pipeline_mode<synchronous>, transform_indices = @transform_5, window_bounds = array<i64: 400, 400>}, {pipeline_mode = #tpu.pipeline_mode<synchronous>, transform_indices = @transform_6, window_bounds = array<i64: 1, 400>}, {pipeline_mode = #tpu.pipeline_mode<synchronous>, transform_indices = @transform_7, window_bounds = array<i64: 1, 400>}, {pipeline_mode = #tpu.pipeline_mode<synchronous>, transform_indices = @transform_8, window_bounds = array<i64: 1, 1>}, {transform_indices = @transform_9, window_bounds = array<i64: 8, 1>}]} {
    %c0 = arith.constant 0 : index
    %c0_0 = arith.constant 0 : index
    %0 = vector.load %arg1[%c0, %c0_0] : memref<8x2xf32, #tpu.memory_space<vmem>>, vector<8x2xf32>
    %c0_1 = arith.constant 0 : index
    %c0_2 = arith.constant 0 : index
    %1 = vector.load %arg2[%c0_1, %c0_2] : memref<2x400xf32, #tpu.memory_space<vmem>>, vector<2x400xf32>
    %2 = vector.extract_strided_slice %0 {offsets = [0, 0], sizes = [8, 1], strides = [1, 1]} : vector<8x2xf32> to vector<8x1xf32>
    %3 = vector.extract_strided_slice %1 {offsets = [0, 0], sizes = [1, 400], strides = [1, 1]} : vector<2x400xf32> to vector<1x400xf32>
    %4 = vector.broadcast %2 : vector<8x1xf32> to vector<8x400xf32>
    %5 = vector.broadcast %3 : vector<1x400xf32> to vector<8x400xf32>
    %6 = arith.mulf %4, %5 : vector<8x400xf32>
    %7 = vector.extract_strided_slice %0 {offsets = [0, 1], sizes = [8, 1], strides = [1, 1]} : vector<8x2xf32> to vector<8x1xf32>
    %8 = vector.extract_strided_slice %1 {offsets = [1, 0], sizes = [1, 400], strides = [1, 1]} : vector<2x400xf32> to vector<1x400xf32>
    %9 = vector.broadcast %7 : vector<8x1xf32> to vector<8x400xf32>
    %10 = vector.broadcast %8 : vector<1x400xf32> to vector<8x400xf32>
    %11 = arith.mulf %9, %10 : vector<8x400xf32>
    %12 = arith.addf %6, %11 : vector<8x400xf32>
    %c0_3 = arith.constant 0 : index
    %c0_4 = arith.constant 0 : index
    %13 = vector.load %arg3[%c0_3, %c0_4] : memref<1x400xf32, #tpu.memory_space<vmem>>, vector<1x400xf32>
    %14 = vector.broadcast %13 : vector<1x400xf32> to vector<8x400xf32>
    %15 = arith.addf %12, %14 : vector<8x400xf32>
    %cst = arith.constant 0.000000e+00 : f32
    %16 = vector.broadcast %cst : f32 to vector<8x400xf32>
    %17 = arith.maximumf %15, %16 : vector<8x400xf32>
    %18 = arith.truncf %17 : vector<8x400xf32> to vector<8x400xbf16>
    %c0_5 = arith.constant 0 : index
    %c0_6 = arith.constant 0 : index
    %19 = vector.load %arg4[%c0_5, %c0_6] : memref<400x400xbf16, #tpu.memory_space<vmem>>, vector<400x400xbf16>
    %cst_7 = arith.constant dense<0.000000e+00> : vector<8x400xf32>
    %20 = tpu.matmul %18, %19, %cst_7 {dimension_numbers = #tpu.dot_dimension_numbers<[1], [0], [0], [1], [0, 0, 1, 1], [], []>} : vector<8x400xbf16>, vector<400x400xbf16>, vector<8x400xf32> -> vector<8x400xf32>
    %c0_8 = arith.constant 0 : index
    %c0_9 = arith.constant 0 : index
    %21 = vector.load %arg5[%c0_8, %c0_9] : memref<1x400xf32, #tpu.memory_space<vmem>>, vector<1x400xf32>
    %22 = vector.broadcast %21 : vector<1x400xf32> to vector<8x400xf32>
    %23 = arith.addf %20, %22 : vector<8x400xf32>
    %cst_10 = arith.constant 0.000000e+00 : f32
    %24 = vector.broadcast %cst_10 : f32 to vector<8x400xf32>
    %25 = arith.maximumf %23, %24 : vector<8x400xf32>
    %26 = arith.truncf %25 : vector<8x400xf32> to vector<8x400xbf16>
    %c0_11 = arith.constant 0 : index
    %c0_12 = arith.constant 0 : index
    %27 = vector.load %arg6[%c0_11, %c0_12] : memref<400x400xbf16, #tpu.memory_space<vmem>>, vector<400x400xbf16>
    %cst_13 = arith.constant dense<0.000000e+00> : vector<8x400xf32>
    %28 = tpu.matmul %26, %27, %cst_13 {dimension_numbers = #tpu.dot_dimension_numbers<[1], [0], [0], [1], [0, 0, 1, 1], [], []>} : vector<8x400xbf16>, vector<400x400xbf16>, vector<8x400xf32> -> vector<8x400xf32>
    %c0_14 = arith.constant 0 : index
    %c0_15 = arith.constant 0 : index
    %29 = vector.load %arg7[%c0_14, %c0_15] : memref<1x400xf32, #tpu.memory_space<vmem>>, vector<1x400xf32>
    %30 = vector.broadcast %29 : vector<1x400xf32> to vector<8x400xf32>
    %31 = arith.addf %28, %30 : vector<8x400xf32>
    %cst_16 = arith.constant 0.000000e+00 : f32
    %32 = vector.broadcast %cst_16 : f32 to vector<8x400xf32>
    %33 = arith.maximumf %31, %32 : vector<8x400xf32>
    %c0_17 = arith.constant 0 : index
    %c0_18 = arith.constant 0 : index
    %34 = vector.load %arg8[%c0_17, %c0_18] : memref<1x400xf32, #tpu.memory_space<vmem>>, vector<1x400xf32>
    %35 = vector.broadcast %34 : vector<1x400xf32> to vector<8x400xf32>
    %36 = arith.mulf %33, %35 : vector<8x400xf32>
    %cst_19 = arith.constant dense<0.000000e+00> : vector<8xf32>
    %37 = vector.multi_reduction <add>, %36, %cst_19 [1] : vector<8x400xf32> to vector<8xf32>
    %38 = vector.shape_cast %37 : vector<8xf32> to vector<8x1xf32>
    %c0_20 = arith.constant 0 : index
    %c0_21 = arith.constant 0 : index
    %39 = vector.load %arg9[%c0_20, %c0_21] : memref<1x1xf32, #tpu.memory_space<vmem>>, vector<1x1xf32>
    %40 = vector.broadcast %39 : vector<1x1xf32> to vector<8x1xf32>
    %41 = arith.addf %38, %40 : vector<8x1xf32>
    %42 = arith.negf %41 : vector<8x1xf32>
    %43 = math.exp %42 : vector<8x1xf32>
    %cst_22 = arith.constant 1.000000e+00 : f32
    %44 = vector.broadcast %cst_22 : f32 to vector<8x1xf32>
    %45 = arith.addf %44, %43 : vector<8x1xf32>
    %46 = arith.divf %44, %45 : vector<8x1xf32>
    %c0_23 = arith.constant 0 : index
    %c0_24 = arith.constant 0 : index
    %47 = vector.load %arg10[%c0_23, %c0_24] : memref<8x1xf32, #tpu.memory_space<vmem>>, vector<8x1xf32>
    tpu.vector_store %arg10[%c0_23, %c0_24], %46 {strides = array<i32>} : memref<8x1xf32, #tpu.memory_space<vmem>>, vector<8x1xf32>,
    return
  }
  func.func @transform_0(%arg0: i32) -> (i32, i32) {
    %c0_i32 = arith.constant 0 : i32
    %c0_i32_0 = arith.constant 0 : i32
    return %arg0, %c0_i32 : i32, i32
  }
  func.func @transform_1(%arg0: i32) -> (i32, i32) {
    %c0_i32 = arith.constant 0 : i32
    %c0_i32_0 = arith.constant 0 : i32
    %c0_i32_1 = arith.constant 0 : i32
    return %c0_i32, %c0_i32_0 : i32, i32
  }
  func.func @transform_2(%arg0: i32) -> (i32, i32) {
    %c0_i32 = arith.constant 0 : i32
    %c0_i32_0 = arith.constant 0 : i32
    %c0_i32_1 = arith.constant 0 : i32
    return %c0_i32, %c0_i32_0 : i32, i32
  }
  func.func @transform_3(%arg0: i32) -> (i32, i32) {
    %c0_i32 = arith.constant 0 : i32
    %c0_i32_0 = arith.constant 0 : i32
    %c0_i32_1 = arith.constant 0 : i32
    return %c0_i32, %c0_i32_0 : i32, i32
  }
  func.func @transform_4(%arg0: i32) -> (i32, i32) {
    %c0_i32 = arith.constant 0 : i32
    %c0_i32_0 = arith.constant 0 : i32
    %c0_i32_1 = arith.constant 0 : i32
    return %c0_i32, %c0_i32_0 : i32, i32
  }
  func.func @transform_5(%arg0: i32) -> (i32, i32) {
    %c0_i32 = arith.constant 0 : i32
    %c0_i32_0 = arith.constant 0 : i32
    %c0_i32_1 = arith.constant 0 : i32
    return %c0_i32, %c0_i32_0 : i32, i32
  }
  func.func @transform_6(%arg0: i32) -> (i32, i32) {
    %c0_i32 = arith.constant 0 : i32
    %c0_i32_0 = arith.constant 0 : i32
    %c0_i32_1 = arith.constant 0 : i32
    return %c0_i32, %c0_i32_0 : i32, i32
  }
  func.func @transform_7(%arg0: i32) -> (i32, i32) {
    %c0_i32 = arith.constant 0 : i32
    %c0_i32_0 = arith.constant 0 : i32
    %c0_i32_1 = arith.constant 0 : i32
    return %c0_i32, %c0_i32_0 : i32, i32
  }
  func.func @transform_8(%arg0: i32) -> (i32, i32) {
    %c0_i32 = arith.constant 0 : i32
    %c0_i32_0 = arith.constant 0 : i32
    %c0_i32_1 = arith.constant 0 : i32
    return %c0_i32, %c0_i32_0 : i32, i32
  }
  func.func @transform_9(%arg0: i32) -> (i32, i32) {
    %c0_i32 = arith.constant 0 : i32
    %c0_i32_0 = arith.constant 0 : i32
    return %arg0, %c0_i32 : i32, i32
  }
}

</mosaic_0001>

<bundles_post_ra>
// kernel: discriminator_forward.1
= control target key start
LH: loop header
LB: loop body
LE: loop exit
PB: predicated region body
PF: predicated region fallthrough
CT: control target
= control target key end

     0   :  { %v2828_v0 = vmov 0   ;;  %v2829_v25 = vmov 1   ;;  %vm715_vm0 = vcmask 130048   ;;  %vm1804_vm3 = vcmask 7168   ;;  %s4170_s0 = inlined_call_operand.vmem [shape: f32[8,2], index: 0, kind: input, shape index: {}]   ;;  %s4171_s3 = inlined_call_operand.vmem [shape: bf16[400,400], index: 3, kind: input, shape index: {}]   ;;  %s4172_s1 = inlined_call_operand.vmem [shape: f32[2,400], index: 1, kind: input, shape index: {}]   ;;  %s4173_s2 = inlined_call_operand.vmem [shape: f32[1,400], index: 2, kind: input, shape index: {}]   ;;  %s4174_s5 = inlined_call_operand.vmem [shape: bf16[400,400], index: 5, kind: input, shape index: {}]   ;;  %s4175_s4 = inlined_call_operand.vmem [shape: f32[1,400], index: 4, kind: input, shape index: {}]   ;;  %s4176_s6 = inlined_call_operand.vmem [shape: f32[1,400], index: 6, kind: input, shape index: {}]   ;;  %s4177_s7 = inlined_call_operand.vmem [shape: f32[1,400], index: 7, kind: input, shape index: {}]   ;;  %s4178_s8 = inlined_call_operand.<no memory space> [shape: f32[1,1], index: 8, kind: input, shape index: {}]   ;;  %s4179_s9 = inlined_call_operand.vmem [shape: f32[8,1], index: 9, kind: output, shape index: {}]  }
   0x1   :  { %2821 = vset.pattern.permute.xlu0 %v2828_v0  ;;  %v35_v1 = vld [vmem:[%s4170_s0] sm:$0xff]  ;;  %v2649_v3 = vld [vmem:[%s4171_s3 + $0xec] sm:$0xf0]  ;;  %v1926_v32 = vld [vmem:[%s4171_s3 + $0xf0] sm:$0xf0] }
   0x2   :  { %v1924_v2 = vld [vmem:[%s4171_s3 + $0xe0] sm:$0xf]  ;;  %39 = vperm.xlu0 %2821, %v35_v1   ;;  %v2645_v6 = vld [vmem:[%s4171_s3 + $0xcc] sm:$0xf0]  ;;  %v2647_v28 = vld [vmem:[%s4171_s3 + $0xe4] sm:$0xf] }
   0x3   :  { %v1925_v4 = vor.u32 %v2649_v3, %v1924_v2  ;;  %v1908_v5 = vld [vmem:[%s4171_s3 + $0xc0] sm:$0xf]  ;;  %v2681_v10 = vld [vmem:[%s4171_s3 + $0x1ec] sm:$0xf0]  ;;  %v1929_v35 = vor.u32 %v2647_v28, %v1926_v32  ;;  %v2643_v40 = vld [vmem:[%s4171_s3 + $0xc4] sm:$0xf] }
   0x4   :  { %v1909_v7 = vor.u32 %v2645_v6, %v1908_v5  ;;  %v1892_v8 = vld [vmem:[%s4171_s3 + $0xa0] sm:$0xf]  ;;  %v2641_v11 = vld [vmem:[%s4171_s3 + $0xac] sm:$0xf0]  ;;  %v1910_v41 = vld [vmem:[%s4171_s3 + $0xd0] sm:$0xf0] }
   0x5   :  { %719 = vmatpush.bf16.msra.mxu0 %v1925_v4  ;;  %v2052_v9 = vld [vmem:[%s4171_s3 + $0x1e0] sm:$0xf]  ;;  %v2677_v14 = vld [vmem:[%s4171_s3 + $0x1cc] sm:$0xf0]  ;;  %v1893_v18 = vor.u32 %v2641_v11, %v1892_v8  ;;  %v1913_v42 = vor.u32 %v2643_v40, %v1910_v41  ;;  %v2639_v51 = vld [vmem:[%s4171_s3 + $0xa4] sm:$0xf] }
   0x6   :  { %v2053_v12 = vor.u32 %v2681_v10, %v2052_v9  ;;  %v2036_v13 = vld [vmem:[%s4171_s3 + $0x1c0] sm:$0xf]  ;;  %v2637_v16 = vld [vmem:[%s4171_s3 + $0x8c] sm:$0xf0]  ;;  %v1894_v52 = vld [vmem:[%s4171_s3 + $0xb0] sm:$0xf0] }
   0x7   :  { %v1876_v15 = vld [vmem:[%s4171_s3 + $0x80] sm:$0xf]  ;;  %v2037_v17 = vor.u32 %v2677_v14, %v2036_v13  ;;  %v2673_v20 = vld [vmem:[%s4171_s3 + $0x1ac] sm:$0xf0]  ;;  %v1897_v56 = vor.u32 %v2639_v51, %v1894_v52  ;;  %v2679_v6 = vld [vmem:[%s4171_s3 + $0x1e4] sm:$0xf] }
   0x8   :  { %732 = vmatpush.bf16.msra.mxu1 %v2053_v12  ;;  %v2020_v19 = vld [vmem:[%s4171_s3 + $0x1a0] sm:$0xf]  ;;  %v2713_v22 = vld [vmem:[%s4171_s3 + $0x2ec] sm:$0xf0]  ;;  %v1877_v33 = vor.u32 %v2637_v16, %v1876_v15  ;;  %v2675_v11 = vld [vmem:[%s4171_s3 + $0x1c4] sm:$0xf] }
   0x9   :  { %720 = vmatpush.bf16.msra.mxu0 %v1909_v7  ;;  %v2180_v21 = vld [vmem:[%s4171_s3 + $0x2e0] sm:$0xf]  ;;  %v2717_v24 = vld [vmem:[%s4171_s3 + $0x30c] sm:$0xf0]  ;;  %v2021_v30 = vor.u32 %v2673_v20, %v2020_v19  ;;  %v2054_v7 = vld [vmem:[%s4171_s3 + $0x1f0] sm:$0xf0] }
   0xa   :  { %v2196_v23 = vld [vmem:[%s4171_s3 + $0x300] sm:$0xf]  ;;  %2822 = vset.pattern.permute.xlu0 %v2829_v25  ;;  %v2181_v26 = vor.u32 %v2713_v22, %v2180_v21  ;;  %v2669_v34 = vld [vmem:[%s4171_s3 + $0x18c] sm:$0xf0]  ;;  %v2057_v10 = vor.u32 %v2679_v6, %v2054_v7  ;;  %v2038_v12 = vld [vmem:[%s4171_s3 + $0x1d0] sm:$0xf0] }
   0xb   :  { %v2197_v27 = vor.u32 %v2717_v24, %v2196_v23  ;;  %60 = vperm.xlu0 %2822, %v35_v1   ;;  %v1860_v29 = vld [vmem:[%s4171_s3 + $0x60] sm:$0xf]  ;;  %v2709_v37 = vld [vmem:[%s4171_s3 + $0x2cc] sm:$0xf0]  ;;  %v2041_v13 = vor.u32 %v2675_v11, %v2038_v12  ;;  %v2671_v14 = vld [vmem:[%s4171_s3 + $0x1a4] sm:$0xf] }
   0xc   :  { %733 = vmatpush.bf16.msra.mxu1 %v2037_v17  ;;  %v2004_v31 = vld [vmem:[%s4171_s3 + $0x180] sm:$0xf]  ;;  %745 = vmatpush.bf16.msra.mxu2 %v2181_v26  ;;  %v2633_v38 = vld [vmem:[%s4171_s3 + $0x6c] sm:$0xf0]  ;;  %v2022_v15 = vld [vmem:[%s4171_s3 + $0x1b0] sm:$0xf0] }
   0xd   :  { %721 = vmatpush.bf16.msra.mxu0 %v1893_v18  ;;  %v2164_v36 = vld [vmem:[%s4171_s3 + $0x2c0] sm:$0xf]  ;;  %765 = vmatpush.bf16.msra.mxu3 %v2197_v27  ;;  %v2005_v45 = vor.u32 %v2669_v34, %v2004_v31  ;;  %v2705_v47 = vld [vmem:[%s4171_s3 + $0x2ac] sm:$0xf0]  ;;  %v1861_v48 = vor.u32 %v2633_v38, %v1860_v29  ;;  %v2025_v16 = vor.u32 %v2671_v14, %v2022_v15  ;;  %v2635_v17 = vld [vmem:[%s4171_s3 + $0x84] sm:$0xf] }
   0xe   :  { %v2165_v39 = vor.u32 %v2709_v37, %v2164_v36  ;;  %v2148_v43 = vld [vmem:[%s4171_s3 + $0x2a0] sm:$0xf]  ;;  %v2665_v49 = vld [vmem:[%s4171_s3 + $0x16c] sm:$0xf0]  ;;  %v1878_v18 = vld [vmem:[%s4171_s3 + $0x90] sm:$0xf0] }
   0xf   :  { %v1844_v44 = vld [vmem:[%s4171_s3 + $0x40] sm:$0xf]  ;;  %v2149_v50 = vor.u32 %v2705_v47, %v2148_v43  ;;  %v2629_v53 = vld [vmem:[%s4171_s3 + $0x4c] sm:$0xf0]  ;;  %v1881_v19 = vor.u32 %v2635_v17, %v1878_v18  ;;  %v2667_v25 = vld [vmem:[%s4171_s3 + $0x184] sm:$0xf] }
  0x10   :  { %734 = vmatpush.bf16.msra.mxu1 %v2021_v30  ;;  %v1988_v46 = vld [vmem:[%s4171_s3 + $0x160] sm:$0xf]  ;;  %746 = vmatpush.bf16.msra.mxu2 %v2165_v39  ;;  %v2701_v55 = vld [vmem:[%s4171_s3 + $0x28c] sm:$0xf0]  ;;  %v1845_v58 = vor.u32 %v2629_v53, %v1844_v44  ;;  %v2006_v26 = vld [vmem:[%s4171_s3 + $0x190] sm:$0xf0] }
  0x11   :  { %771 = vmatpush.bf16.msrb.mxu3 %v1929_v35  ;;  %722 = vmatpush.bf16.msra.mxu0 %v1877_v33  ;;  %v2132_v54 = vld [vmem:[%s4171_s3 + $0x280] sm:$0xf]  ;;  %v1989_v57 = vor.u32 %v2665_v49, %v1988_v46  ;;  %v2661_v60 = vld [vmem:[%s4171_s3 + $0x14c] sm:$0xf0]  ;;  %v2009_v28 = vor.u32 %v2667_v25, %v2006_v26  ;;  %v2711_v29 = vld [vmem:[%s4171_s3 + $0x2e4] sm:$0xf] }
  0x12   :  { %v1972_v59 = vld [vmem:[%s4171_s3 + $0x140] sm:$0xf]  ;;  %v2133_v61 = vor.u32 %v2701_v55, %v2132_v54  ;;  %v2625_v63 = vld [vmem:[%s4171_s3 + $0x2c] sm:$0xf0]  ;;  %v2182_v30 = vld [vmem:[%s4171_s3 + $0x2f0] sm:$0xf0] }
  0x13   :  { %v1828_v62 = vld [vmem:[%s4171_s3 + $0x20] sm:$0xf]  ;;  %v1973_v0 = vor.u32 %v2661_v60, %v1972_v59  ;;  %v2657_v3 = vld [vmem:[%s4171_s3 + $0x12c] sm:$0xf0]  ;;  %v2631_v31 = vld [vmem:[%s4171_s3 + $0x64] sm:$0xf]  ;;  %v2185_v32 = vor.u32 %v2711_v29, %v2182_v30 }
  0x14   :  { %735 = vmatpush.bf16.msra.mxu1 %v2005_v45  ;;  %747 = vmatpush.bf16.msra.mxu2 %v2149_v50  ;;  %v1829_v1 = vor.u32 %v2625_v63, %v1828_v62  ;;  %v1956_v2 = vld [vmem:[%s4171_s3 + $0x120] sm:$0xf]  ;;  %v2621_v5 = vld [vmem:[%s4171_s3 + $0xc] sm:$0xf0]  ;;  %v1862_v33 = vld [vmem:[%s4171_s3 + $0x70] sm:$0xf0] }
  0x15   :  { %772 = vmatpush.bf16.msrb.mxu3 %v1913_v42  ;;  %723 = vmatpush.bf16.msra.mxu0 %v1861_v48  ;;  %v1812_v4 = vld [vmem:[%s4171_s3] sm:$0xf]  ;;  %v1957_v8 = vor.u32 %v2657_v3, %v1956_v2  ;;  %v2653_v21 = vld [vmem:[%s4171_s3 + $0x10c] sm:$0xf0]  ;;  %v1865_v36 = vor.u32 %v2631_v31, %v1862_v33  ;;  %v2663_v38 = vld [vmem:[%s4171_s3 + $0x164] sm:$0xf] }
  0x16   :  { %v1813_v9 = vor.u32 %v2621_v5, %v1812_v4  ;;  %v1940_v20 = vld [vmem:[%s4171_s3 + $0x100] sm:$0xf]  ;;  %v2697_v24 = vld [vmem:[%s4171_s3 + $0x26c] sm:$0xf0]  ;;  %v1990_v39 = vld [vmem:[%s4171_s3 + $0x170] sm:$0xf0] }
  0x17   :  { %v2116_v22 = vld [vmem:[%s4171_s3 + $0x260] sm:$0xf]  ;;  %v1941_v23 = vor.u32 %v2653_v21, %v1940_v20  ;;  %v2693_v35 = vld [vmem:[%s4171_s3 + $0x24c] sm:$0xf0]  ;;  %v2707_v40 = vld [vmem:[%s4171_s3 + $0x2c4] sm:$0xf]  ;;  %v1993_v41 = vor.u32 %v2663_v38, %v1990_v39 }
  0x18   :  { %736 = vmatpush.bf16.msra.mxu1 %v1989_v57  ;;  %748 = vmatpush.bf16.msra.mxu2 %v2133_v61  ;;  %v2117_v27 = vor.u32 %v2697_v24, %v2116_v22  ;;  %v2100_v34 = vld [vmem:[%s4171_s3 + $0x240] sm:$0xf]  ;;  %v2166_v42 = vld [vmem:[%s4171_s3 + $0x2d0] sm:$0xf0]  ;;  %v2627_v44 = vld [vmem:[%s4171_s3 + $0x44] sm:$0xf] }
  0x19   :  { %773 = vmatpush.bf16.msrb.mxu3 %v1897_v56  ;;  %724 = vmatpush.bf16.msra.mxu0 %v1845_v58  ;;  %v2101_v37 = vor.u32 %v2693_v35, %v2100_v34  ;;  %v2169_v43 = vor.u32 %v2707_v40, %v2166_v42  ;;  %v1846_v45 = vld [vmem:[%s4171_s3 + $0x50] sm:$0xf0]  ;;  %v2084_v47 = vld [vmem:[%s4171_s3 + $0x220] sm:$0xf]  ;;  %v2689_v48 = vld [vmem:[%s4171_s3 + $0x22c] sm:$0xf0] }
  0x1a   :  { %v1849_v46 = vor.u32 %v2627_v44, %v1846_v45  ;;  %v2659_v49 = vld [vmem:[%s4171_s3 + $0x144] sm:$0xf]  ;;  %v2085_v50 = vor.u32 %v2689_v48, %v2084_v47  ;;  %v1974_v51 = vld [vmem:[%s4171_s3 + $0x150] sm:$0xf0]  ;;  %v2068_v59 = vld [vmem:[%s4171_s3 + $0x200] sm:$0xf] }
  0x1b   :  { %v2703_v52 = vld [vmem:[%s4171_s3 + $0x2a4] sm:$0xf]  ;;  %v2150_v53 = vld [vmem:[%s4171_s3 + $0x2b0] sm:$0xf0]  ;;  %v1977_v54 = vor.u32 %v2659_v49, %v1974_v51  ;;  %v2685_v60 = vld [vmem:[%s4171_s3 + $0x20c] sm:$0xf0] }
  0x1c   :  { %737 = vmatpush.bf16.msra.mxu1 %v1973_v0  ;;  %749 = vmatpush.bf16.msra.mxu2 %v2117_v27  ;;  %v2153_v55 = vor.u32 %v2703_v52, %v2150_v53  ;;  %v2623_v56 = vld [vmem:[%s4171_s3 + $0x24] sm:$0xf]  ;;  %v1830_v57 = vld [vmem:[%s4171_s3 + $0x30] sm:$0xf0]  ;;  %v2069_v62 = vor.u32 %v2685_v60, %v2068_v59  ;;  %v83_v39 = vld [vmem:[%s4173_s2] sm:$0xf] }
  0x1d   :  { %725 = vmatpush.bf16.msra.mxu0 %v1829_v1  ;;  %774 = vmatpush.bf16.msrb.mxu3 %v1881_v19  ;;  %v1833_v58 = vor.u32 %v2623_v56, %v1830_v57  ;;  %v2655_v61 = vld [vmem:[%s4171_s3 + $0x124] sm:$0xf]  ;;  %v1958_v63 = vld [vmem:[%s4171_s3 + $0x130] sm:$0xf0]  ;;  %v85_v44 = vperm.slane %v83_v39, 0  ;;  %v86_v45 = vperm.slane %v83_v39, 1 }
  0x1e   :  { %v2699_v0 = vld [vmem:[%s4171_s3 + $0x284] sm:$0xf]  ;;  %v2134_v1 = vld [vmem:[%s4171_s3 + $0x290] sm:$0xf0]  ;;  %v1961_v2 = vor.u32 %v2655_v61, %v1958_v63  ;;  %v88_v47 = vperm.slane %v83_v39, 3 }
  0x1f   :  { %v2137_v3 = vor.u32 %v2699_v0, %v2134_v1  ;;  %v2619_v4 = vld [vmem:[%s4171_s3 + $0x4] sm:$0xf]  ;;  %v1814_v5 = vld [vmem:[%s4171_s3 + $0x10] sm:$0xf0]  ;;  %v1932_v61 = vld [vmem:[%s4171_s3 + $0xe8] sm:$0xf] }
  0x20   :  { %738 = vmatpush.bf16.msra.mxu1 %v1957_v8  ;;  %750 = vmatpush.bf16.msra.mxu2 %v2101_v37  ;;  %v2715_v6 = vld [vmem:[%s4171_s3 + $0x304] sm:$0xf]  ;;  %v1817_v7 = vor.u32 %v2619_v4, %v1814_v5  ;;  %v2198_v8 = vld [vmem:[%s4171_s3 + $0x310] sm:$0xf0]  ;;  %v2682_v4 = vld [vmem:[%s4171_s3 + $0x1f4] sm:$0xf0] }
  0x21   :  { %726 = vmatpush.bf16.msra.mxu0 %v1813_v9  ;;  %775 = vmatpush.bf16.msrb.mxu3 %v1865_v36  ;;  %v2201_v9 = vor.u32 %v2715_v6, %v2198_v8  ;;  %v1942_v11 = vld [vmem:[%s4171_s3 + $0x110] sm:$0xf0]  ;;  %v2687_v19 = vld [vmem:[%s4171_s3 + $0x224] sm:$0xf]  ;;  %v2188_v5 = vld [vmem:[%s4171_s3 + $0x2e8] sm:$0xf] }
  0x22   :  { %v2118_v14 = vld [vmem:[%s4171_s3 + $0x270] sm:$0xf0]  ;;  %v36_v21 = vld [vmem:[%s4172_s1] sm:$0xff]  ;;  %v2714_v6 = vld [vmem:[%s4171_s3 + $0x2f4] sm:$0xf0] }
  0x23   :  { %v2102_v17 = vld [vmem:[%s4171_s3 + $0x250] sm:$0xf0]  ;;  %v2683_v25 = vld [vmem:[%s4171_s3 + $0x204] sm:$0xf]  ;;  %v44_v27 = vperm.slane %v36_v21, 2  ;;  %v46_v29 = vperm.slane %v36_v21, 6 }
  0x24   :  { %739 = vmatpush.bf16.msra.mxu1 %v1941_v23  ;;  %751 = vmatpush.bf16.msra.mxu2 %v2085_v50  ;;  %v2086_v20 = vld [vmem:[%s4171_s3 + $0x230] sm:$0xf0]  ;;  %v43_v23 = vperm.slane %v36_v21, 0  ;;  %v63_v30 = vperm.slane %v36_v21, 1  ;;  %v64_v31 = vperm.slane %v36_v21, 3  ;;  %v66_v33 = vperm.slane %v36_v21, 7 }
  0x25   :  { %784 = vmatpush.bf16.msrb.mxu0 %v2057_v10  ;;  %776 = vmatpush.bf16.msrb.mxu3 %v1849_v46  ;;  %v2651_v10 = vld [vmem:[%s4171_s3 + $0x104] sm:$0xf]  ;;  %v2089_v22 = vor.u32 %v2687_v19, %v2086_v20  ;;  %v2070_v26 = vld [vmem:[%s4171_s3 + $0x210] sm:$0xf0]  ;;  %v52_v36 = vperm.slane %v44_v27, 0  ;;  %v54_v38 = vperm.slane %v46_v29, 0  ;;  %v2189_v20 = vor.u32 %v2714_v6, %v2188_v5 }
  0x26   :  { %v1945_v12 = vor.u32 %v2651_v10, %v1942_v11  ;;  %v2073_v34 = vor.u32 %v2683_v25, %v2070_v26  ;;  %v51_v35 = vperm.slane %v43_v23, 0  ;;  %v71_v40 = vperm.slane %v63_v30, 1  ;;  %v1916_v19 = vld [vmem:[%s4171_s3 + $0xc8] sm:$0xf]  ;;  %v2678_v23 = vld [vmem:[%s4171_s3 + $0x1d4] sm:$0xf0] }
  0x27   :  { %v87_v46 = vperm.slane %v83_v39, 2  ;;  %v2172_v25 = vld [vmem:[%s4171_s3 + $0x2c8] sm:$0xf]  ;;  %v2710_v26 = vld [vmem:[%s4171_s3 + $0x2d4] sm:$0xf0] }
  0x28   :  { %797 = vmatpush.bf16.msrb.mxu1 %v2185_v32  ;;  %752 = vmatpush.bf16.msra.mxu2 %v2069_v62  ;;  %v65_v32 = vperm.slane %v36_v21, 5  ;;  %v1900_v29 = vld [vmem:[%s4171_s3 + $0xa8] sm:$0xf]  ;;  %v2173_v30 = vor.u32 %v2710_v26, %v2172_v25 }
  0x29   :  { %785 = vmatpush.bf16.msrb.mxu0 %v2041_v13  ;;  %777 = vmatpush.bf16.msrb.mxu3 %v1833_v58  ;;  %v2695_v13 = vld [vmem:[%s4171_s3 + $0x264] sm:$0xf]  ;;  %v1836_v6 = vld [vmem:[%s4171_s3 + $0x28] sm:$0xf] }
  0x2a   :  { %v2121_v15 = vor.u32 %v2695_v13, %v2118_v14  ;;  %v73_v42 = vperm.slane %v65_v32, 1  ;;  %v2028_v32 = vld [vmem:[%s4171_s3 + $0x1a8] sm:$0xf] }
  0x2c   :  { %798 = vmatpush.bf16.msrb.mxu1 %v2169_v43  ;;  %817 = vmatpush.bf16.msrb.mxu2 %v2201_v9  ;;  %v74_v43 = vperm.slane %v66_v33, 1  ;;  %v2674_v33 = vld [vmem:[%s4171_s3 + $0x1b4] sm:$0xf0] }
  0x2d   :  { %786 = vmatpush.bf16.msrb.mxu0 %v2025_v16  ;;  %778 = vmatpush.bf16.msrb.mxu3 %v1817_v7  ;;  %v2691_v16 = vld [vmem:[%s4171_s3 + $0x244] sm:$0xf]  ;;  %v2204_v7 = vld [vmem:[%s4171_s3 + $0x308] sm:$0xf] }
  0x2e   :  { %v2105_v18 = vor.u32 %v2691_v16, %v2102_v17 }
  0x30   :  { %799 = vmatpush.bf16.msrb.mxu1 %v2153_v55 }
  0x31   :  { %787 = vmatpush.bf16.msrb.mxu0 %v2009_v28  ;;  %v45_v28 = vperm.slane %v36_v21, 4  ;;  %v2646_v21 = vld [vmem:[%s4171_s3 + $0xd4] sm:$0xf0] }
  0x32   :  { %v1917_v27 = vor.u32 %v2646_v21, %v1916_v19  ;;  %v2030_v19 = vld [vmem:[%s4171_s3 + $0x1b8] sm:$0xf0] }
  0x33   :  { %v53_v37 = vperm.slane %v45_v28, 0 }
  0x34   :  { %800 = vmatpush.bf16.msrb.mxu1 %v2137_v3  ;;  %v2060_v3 = vld [vmem:[%s4171_s3 + $0x1e8] sm:$0xf] }
  0x35   :  { %788 = vmatpush.bf16.msrb.mxu0 %v1993_v41  ;;  %v72_v41 = vperm.slane %v64_v31, 1  ;;  %v2061_v14 = vor.u32 %v2682_v4, %v2060_v3  ;;  %v2642_v31 = vld [vmem:[%s4171_s3 + $0xb4] sm:$0xf0]  ;;  %v2046_v3 = vld [vmem:[%s4171_s3 + $0x1d8] sm:$0xf0] }
  0x38   :  { %801 = vmatpush.bf16.msrb.mxu1 %v2121_v15 }
  0x39   :  { %789 = vmatpush.bf16.msrb.mxu0 %v1977_v54 }
  0x3c   :  { %802 = vmatpush.bf16.msrb.mxu1 %v2105_v18 }
  0x3d   :  { %790 = vmatpush.bf16.msrb.mxu0 %v1961_v2  ;;  %v2650_v2 = vld [vmem:[%s4171_s3 + $0xf4] sm:$0xf0] }
  0x3e   :  { %v1933_v13 = vor.u32 %v2650_v2, %v1932_v61  ;;  %v2676_v2 = vld [vmem:[%s4171_s3 + $0x1cc] sm:$0xf] }
  0x40   :  { %803 = vmatpush.bf16.msrb.mxu1 %v2089_v22  ;;  %v2044_v22 = vld [vmem:[%s4171_s3 + $0x1c8] sm:$0xf] }
  0x41   :  { %791 = vmatpush.bf16.msrb.mxu0 %v1945_v12  ;;  %v2718_v12 = vld [vmem:[%s4171_s3 + $0x314] sm:$0xf0]  ;;  %v2045_v28 = vor.u32 %v2678_v23, %v2044_v22  ;;  %v1820_v22 = vld [vmem:[%s4171_s3 + $0x8] sm:$0xf] }
  0x42   :  { %v2622_v23 = vld [vmem:[%s4171_s3 + $0x14] sm:$0xf0] }
  0x44   :  { %804 = vmatpush.bf16.msrb.mxu1 %v2073_v34  ;;  %v2156_v34 = vld [vmem:[%s4171_s3 + $0x2a8] sm:$0xf] }
  0x74   :  { %v40_v24 = vpop.permute.xlu0 %39 }
  0x75   :  { %v55_v48 = vmul.f32 %v51_v35, %v40_v24  ;;  %v56_v49 = vmul.f32 %v52_v36, %v40_v24  ;;  %v57_v50 = vmul.f32 %v53_v37, %v40_v24  ;;  %v58_v51 = vmul.f32 %v54_v38, %v40_v24  ;;  %v2706_v35 = vld [vmem:[%s4171_s3 + $0x2b4] sm:$0xf0]  ;;  %v1884_v38 = vld [vmem:[%s4171_s3 + $0x88] sm:$0xf] }
  0x76   :  { %v2205_v24 = vor.u32 %v2718_v12, %v2204_v7  ;;  %v1901_v36 = vor.u32 %v2642_v31, %v1900_v29  ;;  %v2029_v37 = vor.u32 %v2674_v33, %v2028_v32  ;;  %v2157_v39 = vor.u32 %v2706_v35, %v2156_v34  ;;  %v2626_v7 = vld [vmem:[%s4171_s3 + $0x34] sm:$0xf0]  ;;  %v2092_v12 = vld [vmem:[%s4171_s3 + $0x228] sm:$0xf]  ;;  %v1934_v31 = vld [vmem:[%s4171_s3 + $0xf8] sm:$0xf0] }
  0x77   :  { %v2686_v29 = vld [vmem:[%s4171_s3 + $0x214] sm:$0xf0]  ;;  %v2668_v32 = vld [vmem:[%s4171_s3 + $0x18c] sm:$0xf]  ;;  %v2014_v33 = vld [vmem:[%s4171_s3 + $0x198] sm:$0xf0] }
  0x78   :  { %v2712_v34 = vld [vmem:[%s4171_s3 + $0x2ec] sm:$0xf]  ;;  %v2190_v35 = vld [vmem:[%s4171_s3 + $0x2f8] sm:$0xf0] }
  0x7d   :  { %v61_v52 = vpop.permute.xlu0 %60 }
  0x7e   :  { %v75_v53 = vmul.f32 %v71_v40, %v61_v52  ;;  %v76_v54 = vmul.f32 %v72_v41, %v61_v52  ;;  %v77_v55 = vmul.f32 %v73_v42, %v61_v52  ;;  %v78_v56 = vmul.f32 %v74_v43, %v61_v52  ;;  %v2638_v40 = vld [vmem:[%s4171_s3 + $0x94] sm:$0xf0]  ;;  %v2012_v41 = vld [vmem:[%s4171_s3 + $0x188] sm:$0xf] }
  0x7f   :  { %v2670_v42 = vld [vmem:[%s4171_s3 + $0x194] sm:$0xf0]  ;;  %v2140_v43 = vld [vmem:[%s4171_s3 + $0x288] sm:$0xf] }
  0x80   :  { %v79_v57 = vadd.f32 %v75_v53, %v55_v48  ;;  %v80_v58 = vadd.f32 %v76_v54, %v56_v49  ;;  %v81_v59 = vadd.f32 %v77_v55, %v57_v50  ;;  %v82_v60 = vadd.f32 %v78_v56, %v58_v51  ;;  %v2634_v48 = vld [vmem:[%s4171_s3 + $0x74] sm:$0xf0]  ;;  %v1996_v50 = vld [vmem:[%s4171_s3 + $0x168] sm:$0xf]  ;;  %v2680_v54 = vld [vmem:[%s4171_s3 + $0x1ec] sm:$0xf] }
  0x81   :  { %v2666_v51 = vld [vmem:[%s4171_s3 + $0x174] sm:$0xf0]  ;;  %v2124_v52 = vld [vmem:[%s4171_s3 + $0x268] sm:$0xf]  ;;  %v2062_v55 = vld [vmem:[%s4171_s3 + $0x1f8] sm:$0xf0] }
  0x82   :  { %v93_v62 = vadd.f32 %v85_v44, %v79_v57  ;;  %v94_v63 = vadd.f32 %v86_v45, %v80_v58  ;;  %v95_v0 = vadd.f32 %v87_v46, %v81_v59  ;;  %v96_v1 = vadd.f32 %v88_v47, %v82_v60  ;;  %v2702_v44 = vld [vmem:[%s4171_s3 + $0x294] sm:$0xf0]  ;;  %v1868_v47 = vld [vmem:[%s4171_s3 + $0x68] sm:$0xf] }
  0x83   :  { %v1885_v45 = vor.u32 %v2638_v40, %v1884_v38  ;;  %v2013_v46 = vor.u32 %v2670_v42, %v2012_v41  ;;  %v2141_v49 = vor.u32 %v2702_v44, %v2140_v43  ;;  %v2698_v53 = vld [vmem:[%s4171_s3 + $0x274] sm:$0xf0]  ;;  %v1869_v56 = vor.u32 %v2634_v48, %v1868_v47  ;;  %v1852_v58 = vld [vmem:[%s4171_s3 + $0x48] sm:$0xf]  ;;  %v2644_v40 = vld [vmem:[%s4171_s3 + $0xcc] sm:$0xf] }
  0x84   :  { %v97_v8 = vmax.f32 %v93_v62, 0.0  ;;  %v98_v9 = vmax.f32 %v94_v63, 0.0  ;;  %v99_v10 = vmax.f32 %v95_v0, 0.0  ;;  %v100_v11 = vmax.f32 %v96_v1, 0.0  ;;  %v2630_v59 = vld [vmem:[%s4171_s3 + $0x54] sm:$0xf0] }
  0x85   :  { %v1997_v57 = vor.u32 %v2666_v51, %v1996_v50  ;;  %v2125_v60 = vor.u32 %v2698_v53, %v2124_v52  ;;  %v2065_v61 = vor.u32 %v2680_v54, %v2062_v55  ;;  %v1980_v62 = vld [vmem:[%s4171_s3 + $0x148] sm:$0xf]  ;;  %v2662_v63 = vld [vmem:[%s4171_s3 + $0x154] sm:$0xf0]  ;;  %v1853_v4 = vor.u32 %v2630_v59, %v1852_v58  ;;  %v1918_v41 = vld [vmem:[%s4171_s3 + $0xd8] sm:$0xf0] }
  0x86   :  { %v3213_v15 = vpack.c.bf16 %v97_v8, %v97_v8  ;;  %v3215_v16 = vpack.c.bf16 %v98_v9, %v98_v9  ;;  %v3217_v17 = vpack.c.bf16 %v99_v10, %v99_v10  ;;  %v3219_v18 = vpack.c.bf16 %v100_v11, %v100_v11  ;;  %v2108_v0 = vld [vmem:[%s4171_s3 + $0x248] sm:$0xf]  ;;  %v2694_v1 = vld [vmem:[%s4171_s3 + $0x254] sm:$0xf0]  ;;  %v2664_v44 = vld [vmem:[%s4171_s3 + $0x16c] sm:$0xf] }
  0x87   :  { %v1981_v5 = vor.u32 %v2662_v63, %v1980_v62  ;;  %v2109_v8 = vor.u32 %v2694_v1, %v2108_v0  ;;  %v2049_v9 = vor.u32 %v2676_v2, %v2046_v3  ;;  %v1964_v10 = vld [vmem:[%s4171_s3 + $0x128] sm:$0xf]  ;;  %v2658_v11 = vld [vmem:[%s4171_s3 + $0x134] sm:$0xf0]  ;;  %v2017_v42 = vor.u32 %v2668_v32, %v2014_v33  ;;  %v1998_v47 = vld [vmem:[%s4171_s3 + $0x178] sm:$0xf0] }
  0x88   :  { %727 = vmatmul.bf16.vlgmr.msra.gmra.mxu0 %v3213_v15  ;;  %740 = vmatmul.bf16.vlgmr.msra.gmra.mxu1 %v3215_v16  ;;  %v1965_v21 = vor.u32 %v2658_v11, %v1964_v10  ;;  %v2193_v43 = vor.u32 %v2712_v34, %v2190_v35  ;;  %v2708_v48 = vld [vmem:[%s4171_s3 + $0x2cc] sm:$0xf]  ;;  %v1921_v50 = vor.u32 %v2644_v40, %v1918_v41  ;;  %v1902_v55 = vld [vmem:[%s4171_s3 + $0xb8] sm:$0xf0]  ;;  %v2312_v40 = vld [vmem:[%s4174_s5 + $0xc0] sm:$0xf] }
  0x89   :  { %753 = vmatmul.bf16.vlgmr.msra.gmra.mxu2 %v3217_v17  ;;  %2210 = vmatmul.msk.bf16.vlgmr.msra.gmra.mxu3 %vm715_vm0, %v3219_v18  ;;  %v2001_v52 = vor.u32 %v2664_v44, %v1998_v47  ;;  %v2640_v54 = vld [vmem:[%s4171_s3 + $0xac] sm:$0xf]  ;;  %v2158_v59 = vld [vmem:[%s4171_s3 + $0x2b8] sm:$0xf0]  ;;  %v2456_v41 = vld [vmem:[%s4174_s5 + $0x1e0] sm:$0xf] }
  0x8a   :  { %823 = vmatpush.bf16.msra.mxu3 %v1933_v13  ;;  %836 = vmatpush.bf16.msra.mxu2 %v2061_v14  ;;  %v2690_v13 = vld [vmem:[%s4171_s3 + $0x234] sm:$0xf0]  ;;  %v2672_v14 = vld [vmem:[%s4171_s3 + $0x1ac] sm:$0xf]  ;;  %v1886_v0 = vld [vmem:[%s4171_s3 + $0x98] sm:$0xf0] }
  0x8b   :  { %849 = vmatpush.bf16.msra.mxu0 %v2189_v20  ;;  %869 = vmatpush.bf16.msra.mxu1 %v2205_v24  ;;  %v1837_v20 = vor.u32 %v2626_v7, %v1836_v6  ;;  %v1948_v24 = vld [vmem:[%s4171_s3 + $0x108] sm:$0xf]  ;;  %v2093_v25 = vor.u32 %v2690_v13, %v2092_v12  ;;  %v2033_v26 = vor.u32 %v2672_v14, %v2030_v19  ;;  %v2704_v58 = vld [vmem:[%s4171_s3 + $0x2ac] sm:$0xf]  ;;  %v1966_v2 = vld [vmem:[%s4171_s3 + $0x138] sm:$0xf0] }
  0x8c   :  { %v2161_v62 = vor.u32 %v2704_v58, %v2158_v59  ;;  %v2636_v63 = vld [vmem:[%s4171_s3 + $0x8c] sm:$0xf]  ;;  %v1950_v11 = vld [vmem:[%s4171_s3 + $0x118] sm:$0xf0]  ;;  %v2248_v59 = vld [vmem:[%s4174_s5 + $0x40] sm:$0xf] }
  0x8d   :  { %v2656_v1 = vld [vmem:[%s4171_s3 + $0x12c] sm:$0xf]  ;;  %v2126_v13 = vld [vmem:[%s4171_s3 + $0x278] sm:$0xf0] }
  0x8e   :  { %824 = vmatpush.bf16.msra.mxu3 %v1917_v27  ;;  %837 = vmatpush.bf16.msra.mxu2 %v2045_v28  ;;  %v2654_v27 = vld [vmem:[%s4171_s3 + $0x114] sm:$0xf0]  ;;  %v2076_v28 = vld [vmem:[%s4171_s3 + $0x208] sm:$0xf]  ;;  %v2700_v3 = vld [vmem:[%s4171_s3 + $0x28c] sm:$0xf]  ;;  %v1969_v6 = vor.u32 %v2656_v1, %v1966_v2 }
  0x8f   :  { %850 = vmatpush.bf16.msra.mxu0 %v2173_v30  ;;  %v2648_v30 = vld [vmem:[%s4171_s3 + $0xec] sm:$0xf]  ;;  %v2077_v38 = vor.u32 %v2686_v29, %v2076_v28  ;;  %v1838_v28 = vld [vmem:[%s4171_s3 + $0x38] sm:$0xf0]  ;;  %v2216_v1 = vld [vmem:[%s4174_s5] sm:$0xf] }
  0x90   :  { %v2652_v10 = vld [vmem:[%s4171_s3 + $0x10c] sm:$0xf]  ;;  %v1822_v34 = vld [vmem:[%s4171_s3 + $0x18] sm:$0xf0]  ;;  %v2721_v2 = vld [vmem:[%s4174_s5 + $0xc] sm:$0xf0] }
  0x91   :  { %v2696_v12 = vld [vmem:[%s4171_s3 + $0x26c] sm:$0xf]  ;;  %v1953_v19 = vor.u32 %v2652_v10, %v1950_v11  ;;  %v2771_v10 = vld [vmem:[%s4174_s5 + $0x1a4] sm:$0xf]  ;;  %v2426_v11 = vld [vmem:[%s4174_s5 + $0x1b0] sm:$0xf0] }
  0x92   :  { %825 = vmatpush.bf16.msra.mxu3 %v1901_v36  ;;  %838 = vmatpush.bf16.msra.mxu2 %v2029_v37  ;;  %v1821_v36 = vor.u32 %v2622_v23, %v1820_v22  ;;  %v1949_v37 = vor.u32 %v2654_v27, %v1948_v24  ;;  %v1854_v22 = vld [vmem:[%s4171_s3 + $0x58] sm:$0xf0]  ;;  %v2692_v23 = vld [vmem:[%s4171_s3 + $0x24c] sm:$0xf] }
  0x93   :  { %851 = vmatpush.bf16.msra.mxu0 %v2157_v39  ;;  %v1937_v39 = vor.u32 %v2648_v30, %v1934_v31  ;;  %v2110_v24 = vld [vmem:[%s4171_s3 + $0x258] sm:$0xf0]  ;;  %v2624_v27 = vld [vmem:[%s4171_s3 + $0x2c] sm:$0xf] }
  0x94   :  { %v2688_v29 = vld [vmem:[%s4171_s3 + $0x22c] sm:$0xf]  ;;  %v2094_v30 = vld [vmem:[%s4171_s3 + $0x238] sm:$0xf0]  ;;  %v1841_v31 = vor.u32 %v2624_v27, %v1838_v28  ;;  %v2394_v27 = vld [vmem:[%s4174_s5 + $0x170] sm:$0xf0] }
  0x95   :  { %v2097_v32 = vor.u32 %v2688_v29, %v2094_v30  ;;  %v2620_v33 = vld [vmem:[%s4171_s3 + $0xc] sm:$0xf]  ;;  %v2376_v29 = vld [vmem:[%s4174_s5 + $0x140] sm:$0xf]  ;;  %v2761_v30 = vld [vmem:[%s4174_s5 + $0x14c] sm:$0xf0] }
  0x96   :  { %826 = vmatpush.bf16.msra.mxu3 %v1885_v45  ;;  %839 = vmatpush.bf16.msra.mxu2 %v2013_v46  ;;  %v2716_v45 = vld [vmem:[%s4171_s3 + $0x30c] sm:$0xf]  ;;  %v2206_v46 = vld [vmem:[%s4171_s3 + $0x318] sm:$0xf0] }
  0x97   :  { %852 = vmatpush.bf16.msra.mxu0 %v2141_v49  ;;  %v2174_v49 = vld [vmem:[%s4171_s3 + $0x2d8] sm:$0xf0]  ;;  %v2209_v51 = vor.u32 %v2716_v45, %v2206_v46  ;;  %v2684_v35 = vld [vmem:[%s4171_s3 + $0x20c] sm:$0xf]  ;;  %v2440_v45 = vld [vmem:[%s4174_s5 + $0x1c0] sm:$0xf] }
  0x98   :  { %792 = vmatmul.bf16.vlgmr.msrb.gmra.mxu0 %v3215_v16  ;;  %805 = vmatmul.bf16.vlgmr.msrb.gmra.mxu1 %v3217_v17  ;;  %v2177_v53 = vor.u32 %v2708_v48, %v2174_v49  ;;  %v2777_v46 = vld [vmem:[%s4174_s5 + $0x1cc] sm:$0xf0]  ;;  %v2296_v49 = vld [vmem:[%s4174_s5 + $0xa0] sm:$0xf] }
  0x99   :  { %779 = vmatmul.bf16.vlgmr.msrb.gmra.mxu3 %v3213_v15  ;;  %2211 = vmatmul.msk.bf16.vlgmr.msrb.gmra.mxu2 %vm715_vm0, %v3219_v18  ;;  %v2441_v47 = vor.u32 %v2777_v46, %v2440_v45  ;;  %v2346_v46 = vld [vmem:[%s4174_s5 + $0x110] sm:$0xf0] }
  0x9a   :  { %827 = vmatpush.bf16.msra.mxu3 %v1869_v56  ;;  %840 = vmatpush.bf16.msra.mxu2 %v1997_v57  ;;  %v2660_v56 = vld [vmem:[%s4171_s3 + $0x14c] sm:$0xf]  ;;  %v1982_v57 = vld [vmem:[%s4171_s3 + $0x158] sm:$0xf0] }
  0x9b   :  { %853 = vmatpush.bf16.msra.mxu0 %v2125_v60  ;;  %888 = vmatpush.bf16.msrb.mxu1 %v2065_v61  ;;  %v1905_v60 = vor.u32 %v2640_v54, %v1902_v55  ;;  %v1985_v61 = vor.u32 %v2660_v56, %v1982_v57  ;;  %v2280_v55 = vld [vmem:[%s4174_s5 + $0x80] sm:$0xf]  ;;  %v2737_v56 = vld [vmem:[%s4174_s5 + $0x8c] sm:$0xf0] }
  0x9c   :  { %v2281_v57 = vor.u32 %v2737_v56, %v2280_v55  ;;  %v2570_v55 = vld [vmem:[%s4174_s5 + $0x2d0] sm:$0xf0] }
  0x9e   :  { %828 = vmatpush.bf16.msra.mxu3 %v1853_v4  ;;  %841 = vmatpush.bf16.msra.mxu2 %v1981_v5  ;;  %v2142_v4 = vld [vmem:[%s4171_s3 + $0x298] sm:$0xf0]  ;;  %v1889_v5 = vor.u32 %v2636_v63, %v1886_v0  ;;  %v2725_v63 = vld [vmem:[%s4174_s5 + $0x2c] sm:$0xf0] }
  0x9f   :  { %854 = vmatpush.bf16.msra.mxu0 %v2109_v8  ;;  %889 = vmatpush.bf16.msrb.mxu1 %v2049_v9  ;;  %v2145_v7 = vor.u32 %v2700_v3, %v2142_v4  ;;  %v2632_v8 = vld [vmem:[%s4171_s3 + $0x6c] sm:$0xf]  ;;  %v1870_v9 = vld [vmem:[%s4171_s3 + $0x78] sm:$0xf0]  ;;  %v2779_v3 = vld [vmem:[%s4174_s5 + $0x1e4] sm:$0xf] }
  0xa0   :  { %v1873_v14 = vor.u32 %v2632_v8, %v1870_v9  ;;  %v2458_v4 = vld [vmem:[%s4174_s5 + $0x1f0] sm:$0xf0] }
  0xa1   :  { %v2442_v8 = vld [vmem:[%s4174_s5 + $0x1d0] sm:$0xf0] }
  0xa2   :  { %829 = vmatpush.bf16.msra.mxu3 %v1837_v20  ;;  %842 = vmatpush.bf16.msra.mxu2 %v1965_v21  ;;  %v2129_v20 = vor.u32 %v2696_v12, %v2126_v13  ;;  %v2628_v21 = vld [vmem:[%s4171_s3 + $0x4c] sm:$0xf]  ;;  %v2429_v12 = vor.u32 %v2771_v10, %v2426_v11  ;;  %v2408_v13 = vld [vmem:[%s4174_s5 + $0x180] sm:$0xf]  ;;  %v2795_v11 = vld [vmem:[%s4174_s5 + $0x264] sm:$0xf] }
  0xa3   :  { %855 = vmatpush.bf16.msra.mxu0 %v2093_v25  ;;  %890 = vmatpush.bf16.msrb.mxu1 %v2033_v26  ;;  %v1857_v25 = vor.u32 %v2628_v21, %v1854_v22  ;;  %v2113_v26 = vor.u32 %v2692_v23, %v2110_v24  ;;  %v2410_v21 = vld [vmem:[%s4174_s5 + $0x190] sm:$0xf0]  ;;  %v2392_v23 = vld [vmem:[%s4174_s5 + $0x160] sm:$0xf]  ;;  %v2765_v24 = vld [vmem:[%s4174_s5 + $0x16c] sm:$0xf0] }
  0xa6   :  { %830 = vmatpush.bf16.msra.mxu3 %v1821_v36  ;;  %843 = vmatpush.bf16.msra.mxu2 %v1949_v37  ;;  %v2749_v36 = vld [vmem:[%s4174_s5 + $0xec] sm:$0xf0]  ;;  %v1825_v37 = vor.u32 %v2620_v33, %v1822_v34  ;;  %v2378_v33 = vld [vmem:[%s4174_s5 + $0x150] sm:$0xf0] }
  0xa7   :  { %856 = vmatpush.bf16.msra.mxu0 %v2077_v38  ;;  %891 = vmatpush.bf16.msrb.mxu1 %v2017_v42  ;;  %v2781_v42 = vld [vmem:[%s4174_s5 + $0x1ec] sm:$0xf0] }
  0xa8   :  { %2212 = vmatmul.msk.bf16.vlgmr.msra.gmra.mxu1 %vm715_vm0, %v3219_v18  ;;  %v2457_v44 = vor.u32 %v2781_v42, %v2456_v41  ;;  %v2584_v41 = vld [vmem:[%s4174_s5 + $0x2e0] sm:$0xf]  ;;  %v2813_v42 = vld [vmem:[%s4174_s5 + $0x2ec] sm:$0xf0] }
  0xa9   :  { %831 = vmatmul.bf16.vlgmr.msra.gmra.mxu3 %v3213_v15  ;;  %844 = vmatmul.bf16.vlgmr.msra.gmra.mxu2 %v3215_v16  ;;  %v2585_v45 = vor.u32 %v2813_v42, %v2584_v41  ;;  %v2810_v41 = vld [vmem:[%s4174_s5 + $0x2d4] sm:$0xf0] }
  0xaa   :  { %875 = vmatpush.bf16.msrb.mxu3 %v1937_v39  ;;  %901 = vmatpush.bf16.msrb.mxu2 %v2193_v43  ;;  %v2745_v43 = vld [vmem:[%s4174_s5 + $0xcc] sm:$0xf0] }
  0xab   :  { %857 = vmatmul.bf16.vlgmr.msra.gmra.mxu0 %v3217_v17  ;;  %892 = vmatpush.bf16.msrb.mxu1 %v2001_v52  ;;  %v2313_v48 = vor.u32 %v2745_v43, %v2312_v40  ;;  %v2773_v52 = vld [vmem:[%s4174_s5 + $0x1ac] sm:$0xf0]  ;;  %v2751_v43 = vld [vmem:[%s4174_s5 + $0x104] sm:$0xf] }
  0xac   :  { %921 = vmatpush.bf16.msrb.mxu0 %v2209_v51  ;;  %v2424_v51 = vld [vmem:[%s4174_s5 + $0x1a0] sm:$0xf] }
  0xae   :  { %876 = vmatpush.bf16.msrb.mxu3 %v1921_v50  ;;  %902 = vmatpush.bf16.msrb.mxu2 %v2177_v53  ;;  %v2741_v50 = vld [vmem:[%s4174_s5 + $0xac] sm:$0xf0]  ;;  %v2425_v53 = vor.u32 %v2773_v52, %v2424_v51  ;;  %v2568_v51 = vld [vmem:[%s4174_s5 + $0x2c0] sm:$0xf] }
  0xaf   :  { %893 = vmatpush.bf16.msrb.mxu1 %v1985_v61  ;;  %v2297_v54 = vor.u32 %v2741_v50, %v2296_v49  ;;  %v2349_v50 = vor.u32 %v2751_v43, %v2346_v46  ;;  %v2809_v52 = vld [vmem:[%s4174_s5 + $0x2cc] sm:$0xf0] }
  0xb0   :  { %1561 = vmatpush.bf16.msra.mxu0 %v2457_v44 }
  0xb2   :  { %877 = vmatpush.bf16.msrb.mxu3 %v1905_v60  ;;  %903 = vmatpush.bf16.msrb.mxu2 %v2161_v62  ;;  %v2729_v60 = vld [vmem:[%s4174_s5 + $0x4c] sm:$0xf0]  ;;  %v2232_v62 = vld [vmem:[%s4174_s5 + $0x20] sm:$0xf] }
  0xb3   :  { %894 = vmatpush.bf16.msrb.mxu1 %v1969_v6  ;;  %v2249_v61 = vor.u32 %v2729_v60, %v2248_v59  ;;  %v2233_v0 = vor.u32 %v2725_v63, %v2232_v62  ;;  %v2461_v6 = vor.u32 %v2779_v3, %v2458_v4  ;;  %v2803_v59 = vld [vmem:[%s4174_s5 + $0x2a4] sm:$0xf]  ;;  %v2554_v60 = vld [vmem:[%s4174_s5 + $0x2b0] sm:$0xf0]  ;;  %v2536_v63 = vld [vmem:[%s4174_s5 + $0x280] sm:$0xf] }
  0xb4   :  { %1562 = vmatpush.bf16.msra.mxu0 %v2441_v47  ;;  %v2811_v47 = vld [vmem:[%s4174_s5 + $0x2e4] sm:$0xf] }
  0xb5   :  { %v2799_v4 = vld [vmem:[%s4174_s5 + $0x284] sm:$0xf] }
  0xb6   :  { %878 = vmatpush.bf16.msrb.mxu3 %v1889_v5  ;;  %904 = vmatpush.bf16.msrb.mxu2 %v2145_v7  ;;  %v2217_v5 = vor.u32 %v2721_v2, %v2216_v1  ;;  %v2775_v7 = vld [vmem:[%s4174_s5 + $0x1c4] sm:$0xf] }
  0xb7   :  { %895 = vmatpush.bf16.msrb.mxu1 %v1953_v19  ;;  %v2445_v9 = vor.u32 %v2775_v7, %v2442_v8  ;;  %v2767_v19 = vld [vmem:[%s4174_s5 + $0x184] sm:$0xf]  ;;  %v2520_v8 = vld [vmem:[%s4174_s5 + $0x260] sm:$0xf] }
  0xb8   :  { %1563 = vmatpush.bf16.msra.mxu0 %v2425_v53  ;;  %v2413_v22 = vor.u32 %v2767_v19, %v2410_v21  ;;  %v2569_v53 = vor.u32 %v2809_v52, %v2568_v51  ;;  %v2504_v21 = vld [vmem:[%s4174_s5 + $0x240] sm:$0xf]  ;;  %v2474_v51 = vld [vmem:[%s4174_s5 + $0x210] sm:$0xf0] }
  0xba   :  { %879 = vmatpush.bf16.msrb.mxu3 %v1873_v14  ;;  %905 = vmatpush.bf16.msrb.mxu2 %v2129_v20  ;;  %v2769_v14 = vld [vmem:[%s4174_s5 + $0x18c] sm:$0xf0] }
  0xbb   :  { %2213 = vmatmul.msk.bf16.vlgmr.msrb.gmra.mxu0 %vm715_vm0, %v3219_v18  ;;  %896 = vmatmul.bf16.vlgmr.msrb.gmra.mxu1 %v3215_v16  ;;  %v2078_v16 = vld [vmem:[%s4171_s3 + $0x218] sm:$0xf0]  ;;  %v2328_v18 = vld [vmem:[%s4174_s5 + $0xe0] sm:$0xf]  ;;  %v2409_v20 = vor.u32 %v2769_v14, %v2408_v13 }
  0xbc   :  { %v2081_v38 = vor.u32 %v2684_v35, %v2078_v16  ;;  %v2329_v39 = vor.u32 %v2749_v36, %v2328_v18  ;;  %v2360_v35 = vld [vmem:[%s4174_s5 + $0x120] sm:$0xf]  ;;  %v2757_v16 = vld [vmem:[%s4174_s5 + $0x12c] sm:$0xf0]  ;;  %v2755_v18 = vld [vmem:[%s4174_s5 + $0x124] sm:$0xf]  ;;  %1574 = vmatpush.bf16.msra.mxu1 %v2585_v45 }
  0xbd   :  { %1564 = vmatpush.bf16.msra.mxu0 %v2409_v20  ;;  %v2361_v36 = vor.u32 %v2757_v16, %v2360_v35  ;;  %v2785_v45 = vld [vmem:[%s4174_s5 + $0x20c] sm:$0xf0] }
  0xbe   :  { %880 = vmatpush.bf16.msrb.mxu3 %v1857_v25  ;;  %906 = vmatpush.bf16.msrb.mxu2 %v2113_v26  ;;  %v2763_v25 = vld [vmem:[%s4174_s5 + $0x164] sm:$0xf]  ;;  %v2393_v26 = vor.u32 %v2765_v24, %v2392_v23 }
  0xbf   :  { %v2397_v28 = vor.u32 %v2763_v25, %v2394_v27  ;;  %v2791_v27 = vld [vmem:[%s4174_s5 + $0x244] sm:$0xf] }
  0xc0   :  { %1575 = vmatpush.bf16.msra.mxu1 %v2569_v53  ;;  %v2806_v53 = vld [vmem:[%s4174_s5 + $0x2b4] sm:$0xf0] }
  0xc1   :  { %1565 = vmatpush.bf16.msra.mxu0 %v2393_v26 }
  0xc2   :  { %881 = vmatpush.bf16.msrb.mxu3 %v1841_v31  ;;  %907 = vmatpush.bf16.msrb.mxu2 %v2097_v32  ;;  %v2759_v31 = vld [vmem:[%s4174_s5 + $0x144] sm:$0xf]  ;;  %v2377_v32 = vor.u32 %v2761_v30, %v2376_v29 }
  0xc3   :  { %v2381_v34 = vor.u32 %v2759_v31, %v2378_v33  ;;  %v2592_v31 = vld [vmem:[%s4174_s5 + $0x2e8] sm:$0xf]  ;;  %v2488_v33 = vld [vmem:[%s4174_s5 + $0x220] sm:$0xf] }
  0xc5   :  { %1566 = vmatpush.bf16.msra.mxu0 %v2377_v32  ;;  %v2814_v32 = vld [vmem:[%s4174_s5 + $0x2f4] sm:$0xf0] }
  0xc6   :  { %882 = vmatpush.bf16.msrb.mxu3 %v1825_v37  ;;  %908 = vmatpush.bf16.msrb.mxu2 %v2081_v38  ;;  %v2362_v37 = vld [vmem:[%s4174_s5 + $0x130] sm:$0xf0]  ;;  %v2344_v38 = vld [vmem:[%s4174_s5 + $0x100] sm:$0xf] }
  0xc7   :  { %v2365_v40 = vor.u32 %v2755_v18, %v2362_v37  ;;  %v2787_v18 = vld [vmem:[%s4174_s5 + $0x224] sm:$0xf]  ;;  %v2593_v37 = vor.u32 %v2814_v32, %v2592_v31  ;;  %v2608_v32 = vld [vmem:[%s4174_s5 + $0x308] sm:$0xf] }
  0xc9   :  { %883 = vmatmul.bf16.vlgmr.msrb.gmra.mxu3 %v3213_v15  ;;  %909 = vmatmul.bf16.vlgmr.msrb.gmra.mxu2 %v3217_v17  ;;  %v2264_v15 = vld [vmem:[%s4174_s5 + $0x60] sm:$0xf]  ;;  %v2733_v17 = vld [vmem:[%s4174_s5 + $0x6c] sm:$0xf0] }
  0xca   :  { %1548 = vmatpush.bf16.msra.mxu3 %v2329_v39  ;;  %v2265_v58 = vor.u32 %v2733_v17, %v2264_v15  ;;  %v2753_v39 = vld [vmem:[%s4174_s5 + $0x10c] sm:$0xf0]  ;;  %1567 = vmatpush.bf16.msra.mxu0 %v2361_v36  ;;  %v2552_v15 = vld [vmem:[%s4174_s5 + $0x2a0] sm:$0xf]  ;;  %v2490_v36 = vld [vmem:[%s4174_s5 + $0x230] sm:$0xf0] }
  0xcb   :  { %v2345_v44 = vor.u32 %v2753_v39, %v2344_v38  ;;  %v2805_v17 = vld [vmem:[%s4174_s5 + $0x2ac] sm:$0xf0]  ;;  %v2493_v38 = vor.u32 %v2787_v18, %v2490_v36 }
  0xce   :  { %1549 = vmatpush.bf16.msra.mxu3 %v2313_v48  ;;  %v2586_v48 = vld [vmem:[%s4174_s5 + $0x2f0] sm:$0xf0]  ;;  %1568 = vmatpush.bf16.msra.mxu0 %v2345_v44  ;;  %v2472_v44 = vld [vmem:[%s4174_s5 + $0x200] sm:$0xf] }
  0xcf   :  { %v2589_v49 = vor.u32 %v2811_v47, %v2586_v48  ;;  %v2560_v48 = vld [vmem:[%s4174_s5 + $0x2a8] sm:$0xf] }
  0xd2   :  { %1550 = vmatpush.bf16.msra.mxu3 %v2297_v54  ;;  %1626 = vmatpush.bf16.msrb.mxu0 %v2589_v49  ;;  %v2807_v54 = vld [vmem:[%s4174_s5 + $0x2c4] sm:$0xf]  ;;  %v2473_v49 = vor.u32 %v2785_v45, %v2472_v44 }
  0xd3   :  { %v2573_v56 = vor.u32 %v2807_v54, %v2570_v55  ;;  %v2600_v55 = vld [vmem:[%s4174_s5 + $0x300] sm:$0xf] }
  0xd6   :  { %1551 = vmatpush.bf16.msra.mxu3 %v2281_v57  ;;  %v3688_v57 = vld [vmem:[%s4175_s4] sm:$0xf]  ;;  %1627 = vmatpush.bf16.msrb.mxu0 %v2573_v56  ;;  %v2817_v56 = vld [vmem:[%s4174_s5 + $0x30c] sm:$0xf0] }
  0xd7   :  { %v207_v62 = vperm.slane %v3688_v57, 0  ;;  %v209_v44 = vperm.slane %v3688_v57, 2 }
  0xda   :  { %1552 = vmatpush.bf16.msra.mxu3 %v2265_v58  ;;  %v2553_v58 = vor.u32 %v2805_v17, %v2552_v15  ;;  %v2601_v15 = vor.u32 %v2817_v56, %v2600_v55  ;;  %v2747_v17 = vld [vmem:[%s4174_s5 + $0xe4] sm:$0xf] }
  0xdc   :  { %1576 = vmatpush.bf16.msra.mxu1 %v2553_v58  ;;  %v2330_v58 = vld [vmem:[%s4174_s5 + $0xf0] sm:$0xf0]  ;;  %1594 = vmatpush.bf16.msra.mxu2 %v2601_v15 }
  0xde   :  { %1553 = vmatpush.bf16.msra.mxu3 %v2249_v61  ;;  %v2557_v61 = vor.u32 %v2803_v59, %v2554_v60  ;;  %v2815_v59 = vld [vmem:[%s4174_s5 + $0x304] sm:$0xf]  ;;  %v2333_v60 = vor.u32 %v2747_v17, %v2330_v58  ;;  %v2234_v58 = vld [vmem:[%s4174_s5 + $0x30] sm:$0xf0] }
  0xdf   :  { %v2723_v17 = vld [vmem:[%s4174_s5 + $0x24] sm:$0xf] }
  0xe0   :  { %1628 = vmatpush.bf16.msrb.mxu0 %v2557_v61  ;;  %v2602_v61 = vld [vmem:[%s4174_s5 + $0x310] sm:$0xf0]  ;;  %1600 = vmatpush.bf16.msrb.mxu2 %v2333_v60 }
  0xe2   :  { %1554 = vmatpush.bf16.msra.mxu3 %v2233_v0  ;;  %v2801_v0 = vld [vmem:[%s4174_s5 + $0x28c] sm:$0xf0] }
  0xe3   :  { %v2537_v3 = vor.u32 %v2801_v0, %v2536_v63  ;;  %v2605_v63 = vor.u32 %v2815_v59, %v2602_v61  ;;  %v2561_v0 = vor.u32 %v2806_v53, %v2560_v48  ;;  %v2727_v48 = vld [vmem:[%s4174_s5 + $0x44] sm:$0xf]  ;;  %v2237_v59 = vor.u32 %v2723_v17, %v2234_v58  ;;  %v2816_v61 = vld [vmem:[%s4174_s5 + $0x30c] sm:$0xf]  ;;  %v2242_v58 = vld [vmem:[%s4174_s5 + $0x38] sm:$0xf0] }
  0xe4   :  { %v2724_v17 = vld [vmem:[%s4174_s5 + $0x2c] sm:$0xf] }
  0xe5   :  { %1577 = vmatpush.bf16.msra.mxu1 %v2537_v3  ;;  %v2544_v3 = vld [vmem:[%s4174_s5 + $0x288] sm:$0xf] }
  0xe6   :  { %1555 = vmatpush.bf16.msra.mxu3 %v2217_v5  ;;  %v2538_v5 = vld [vmem:[%s4174_s5 + $0x290] sm:$0xf0] }
  0xea   :  { %1613 = vmatpush.bf16.msrb.mxu3 %v2461_v6  ;;  %v2541_v6 = vor.u32 %v2799_v4, %v2538_v5  ;;  %v2802_v4 = vld [vmem:[%s4174_s5 + $0x294] sm:$0xf0] }
  0xec   :  { %1629 = vmatpush.bf16.msrb.mxu0 %v2541_v6 }
  0xee   :  { %1614 = vmatpush.bf16.msrb.mxu3 %v2445_v9  ;;  %v2797_v9 = vld [vmem:[%s4174_s5 + $0x26c] sm:$0xf0] }
  0xef   :  { %v2521_v10 = vor.u32 %v2797_v9, %v2520_v8 }
  0xf1   :  { %1578 = vmatpush.bf16.msra.mxu1 %v2521_v10 }
  0xf2   :  { %1615 = vmatpush.bf16.msrb.mxu3 %v2429_v12  ;;  %v2522_v12 = vld [vmem:[%s4174_s5 + $0x270] sm:$0xf0] }
  0xf3   :  { %v2525_v13 = vor.u32 %v2795_v11, %v2522_v12  ;;  %v2545_v11 = vor.u32 %v2802_v4, %v2544_v3  ;;  %v2528_v12 = vld [vmem:[%s4174_s5 + $0x268] sm:$0xf]  ;;  %v2719_v3 = vld [vmem:[%s4174_s5 + $0x4] sm:$0xf]  ;;  %v2218_v4 = vld [vmem:[%s4174_s5 + $0x10] sm:$0xf0] }
  0xf5   :  { %1630 = vmatpush.bf16.msrb.mxu0 %v2525_v13 }
  0xf6   :  { %1616 = vmatpush.bf16.msrb.mxu3 %v2413_v22  ;;  %v2793_v22 = vld [vmem:[%s4174_s5 + $0x24c] sm:$0xf0] }
  0xf7   :  { %v2505_v26 = vor.u32 %v2793_v22, %v2504_v21 }
  0xf9   :  { %1579 = vmatpush.bf16.msra.mxu1 %v2505_v26 }
  0xfa   :  { %1617 = vmatpush.bf16.msrb.mxu3 %v2397_v28  ;;  %v2506_v28 = vld [vmem:[%s4174_s5 + $0x250] sm:$0xf0] }
  0xfb   :  { %v2509_v29 = vor.u32 %v2791_v27, %v2506_v28  ;;  %v2512_v27 = vld [vmem:[%s4174_s5 + $0x248] sm:$0xf]  ;;  %v2794_v28 = vld [vmem:[%s4174_s5 + $0x254] sm:$0xf0] }
  0xfd   :  { %1631 = vmatpush.bf16.msrb.mxu0 %v2509_v29 }
  0xfe   :  { %1618 = vmatpush.bf16.msrb.mxu3 %v2381_v34  ;;  %v2789_v34 = vld [vmem:[%s4174_s5 + $0x22c] sm:$0xf0] }
  0xff   :  { %v2489_v16 = vor.u32 %v2789_v34, %v2488_v33  ;;  %v2818_v33 = vld [vmem:[%s4174_s5 + $0x314] sm:$0xf0] }
 0x100   :  { %v2609_v18 = vor.u32 %v2818_v33, %v2608_v32  ;;  %v2288_v32 = vld [vmem:[%s4174_s5 + $0x88] sm:$0xf]  ;;  %v2738_v33 = vld [vmem:[%s4174_s5 + $0x94] sm:$0xf0] }
 0x101   :  { %1580 = vmatpush.bf16.msra.mxu1 %v2489_v16  ;;  %1632 = vmatpush.bf16.msrb.mxu0 %v2493_v38  ;;  %v2496_v16 = vld [vmem:[%s4174_s5 + $0x228] sm:$0xf] }
 0x102   :  { %1619 = vmatpush.bf16.msrb.mxu3 %v2365_v40  ;;  %v2576_v40 = vld [vmem:[%s4174_s5 + $0x2c8] sm:$0xf] }
 0x103   :  { %v2577_v52 = vor.u32 %v2810_v41, %v2576_v40  ;;  %v2790_v40 = vld [vmem:[%s4174_s5 + $0x234] sm:$0xf0]  ;;  %v2731_v41 = vld [vmem:[%s4174_s5 + $0x64] sm:$0xf] }
 0x104   :  { %v2497_v45 = vor.u32 %v2790_v40, %v2496_v16  ;;  %v2736_v16 = vld [vmem:[%s4174_s5 + $0x8c] sm:$0xf]  ;;  %v2734_v40 = vld [vmem:[%s4174_s5 + $0x74] sm:$0xf0] }
 0x105   :  { %v728_v1 = vpop.f32.mrf.mxu0  ;;  %v741_v2 = vpop.f32.mrf.mxu1  ;;  %1581 = vmatpush.bf16.msra.mxu1 %v2473_v49  ;;  %v2250_v49 = vld [vmem:[%s4174_s5 + $0x50] sm:$0xf0] }
 0x106   :  { %1620 = vmatpush.bf16.msrb.mxu3 %v2349_v50  ;;  %v729_v7 = vadd.f32 %v728_v1, %v207_v62  ;;  %v2783_v50 = vld [vmem:[%s4174_s5 + $0x204] sm:$0xf]  ;;  %v208_v62 = vperm.slane %v3688_v57, 1 }
 0x107   :  { %v2477_v54 = vor.u32 %v2783_v50, %v2474_v51  ;;  %v2743_v1 = vld [vmem:[%s4174_s5 + $0xc4] sm:$0xf] }
 0x108   :  { %v742_v14 = vadd.f32 %v741_v2, %v729_v7  ;;  %v2314_v2 = vld [vmem:[%s4174_s5 + $0xd0] sm:$0xf0] }
 0x109   :  { %1633 = vmatpush.bf16.msrb.mxu0 %v2477_v54  ;;  %1646 = vmatpush.bf16.msrb.mxu1 %v2605_v63  ;;  %v2317_v5 = vor.u32 %v2743_v1, %v2314_v2  ;;  %v2610_v63 = vld [vmem:[%s4174_s5 + $0x318] sm:$0xf0]  ;;  %v2750_v1 = vld [vmem:[%s4174_s5 + $0xf4] sm:$0xf0] }
 0x10a   :  { %v2613_v2 = vor.u32 %v2816_v61, %v2610_v63  ;;  %v2224_v61 = vld [vmem:[%s4174_s5 + $0x8] sm:$0xf] }
 0x10b   :  { %1601 = vmatpush.bf16.msrb.mxu2 %v2317_v5 }
 0x10c   :  { %v754_v19 = vpop.f32.mrf.mxu2  ;;  %v767_v20 = vpop.f32.mrf.mxu3 }
 0x10d   :  { %v755_v23 = vadd.f32 %v754_v19, %v742_v14  ;;  %v730_v24 = vpop.f32.mrf.mxu0  ;;  %v743_v25 = vpop.f32.mrf.mxu1  ;;  %v2798_v14 = vld [vmem:[%s4174_s5 + $0x274] sm:$0xf0]  ;;  %v2739_v19 = vld [vmem:[%s4174_s5 + $0xa4] sm:$0xf] }
 0x10e   :  { %v2735_v24 = vld [vmem:[%s4174_s5 + $0x84] sm:$0xf]  ;;  %v2282_v25 = vld [vmem:[%s4174_s5 + $0x90] sm:$0xf0] }
 0x10f   :  { %v768_v30 = vadd.f32 %v767_v20, %v755_v23  ;;  %v2298_v20 = vld [vmem:[%s4174_s5 + $0xb0] sm:$0xf0]  ;;  %v2529_v23 = vor.u32 %v2798_v14, %v2528_v12  ;;  %v2285_v29 = vor.u32 %v2735_v24, %v2282_v25  ;;  %v2320_v14 = vld [vmem:[%s4174_s5 + $0xc8] sm:$0xf] }
 0x110   :  { %v2301_v21 = vor.u32 %v2739_v19, %v2298_v20  ;;  %v2746_v19 = vld [vmem:[%s4174_s5 + $0xd4] sm:$0xf0]  ;;  %v2304_v25 = vld [vmem:[%s4174_s5 + $0xa8] sm:$0xf] }
 0x111   :  { %v927_v35 = vmax.f32 %v768_v30, 0.0  ;;  %v2321_v24 = vor.u32 %v2746_v19, %v2320_v14  ;;  %v2448_v14 = vld [vmem:[%s4174_s5 + $0x1c8] sm:$0xf]  ;;  %v2778_v19 = vld [vmem:[%s4174_s5 + $0x1d4] sm:$0xf0] }
 0x112   :  { %1602 = vmatpush.bf16.msrb.mxu2 %v2301_v21 }
 0x113   :  { %v3757_v39 = vpack.c.bf16 %v927_v35, %v927_v35  ;;  %v2513_v35 = vor.u32 %v2794_v28, %v2512_v27  ;;  %v2740_v28 = vld [vmem:[%s4174_s5 + $0xac] sm:$0xf] }
 0x114   :  { %v756_v42 = vpop.f32.mrf.mxu2  ;;  %v769_v43 = vpop.f32.mrf.mxu3 }
 0x115   :  { %1556 = vmatmul.bf16.vlgmr.msra.gmra.mxu3 %v3757_v39  ;;  %v793_v46 = vpop.f32.mrf.mxu0  ;;  %v806_v47 = vpop.f32.mrf.mxu1  ;;  %v2266_v42 = vld [vmem:[%s4174_s5 + $0x70] sm:$0xf0] }
 0x116   :  { %1678 = vmatpush.bf16.msra.mxu3 %v2593_v37  ;;  %1603 = vmatpush.bf16.msrb.mxu2 %v2285_v29  ;;  %v2269_v43 = vor.u32 %v2731_v41, %v2266_v42  ;;  %v2306_v29 = vld [vmem:[%s4174_s5 + $0xb8] sm:$0xf0]  ;;  %v2732_v42 = vld [vmem:[%s4174_s5 + $0x6c] sm:$0xf] }
 0x11a   :  { %1679 = vmatpush.bf16.msra.mxu3 %v2577_v52  ;;  %1604 = vmatpush.bf16.msrb.mxu2 %v2269_v43  ;;  %v2253_v52 = vor.u32 %v2727_v48, %v2250_v49  ;;  %v2274_v43 = vld [vmem:[%s4174_s5 + $0x78] sm:$0xf0]  ;;  %v2728_v49 = vld [vmem:[%s4174_s5 + $0x4c] sm:$0xf] }
 0x11b   :  { %v2277_v48 = vor.u32 %v2732_v42, %v2274_v43  ;;  %v2384_v43 = vld [vmem:[%s4174_s5 + $0x148] sm:$0xf] }
 0x11c   :  { %v780_v6 = vpop.f32.mrf.mxu3  ;;  %v819_v7 = vpop.f32.mrf.mxu2 }
 0x11d   :  { %v781_v8 = vadd.f32 %v780_v6, %v208_v62  ;;  %v795_v9 = vpop.f32.mrf.mxu0  ;;  %v808_v10 = vpop.f32.mrf.mxu1  ;;  %v2336_v62 = vld [vmem:[%s4174_s5 + $0xe8] sm:$0xf] }
 0x11e   :  { %1680 = vmatpush.bf16.msra.mxu3 %v2561_v0  ;;  %1605 = vmatpush.bf16.msrb.mxu2 %v2253_v52  ;;  %v2221_v9 = vor.u32 %v2719_v3, %v2218_v4  ;;  %v2780_v4 = vld [vmem:[%s4174_s5 + $0x1ec] sm:$0xf] }
 0x11f   :  { %v794_v13 = vadd.f32 %v793_v46, %v781_v8  ;;  %v2480_v46 = vld [vmem:[%s4174_s5 + $0x208] sm:$0xf]  ;;  %v2338_v8 = vld [vmem:[%s4174_s5 + $0xf8] sm:$0xf0] }
 0x121   :  { %v807_v22 = vadd.f32 %v806_v47, %v794_v13  ;;  %v2786_v47 = vld [vmem:[%s4174_s5 + $0x214] sm:$0xf0] }
 0x122   :  { %1681 = vmatpush.bf16.msra.mxu3 %v2545_v11  ;;  %v2481_v54 = vor.u32 %v2786_v47, %v2480_v46  ;;  %1606 = vmatpush.bf16.msrb.mxu2 %v2237_v59  ;;  %v2337_v11 = vor.u32 %v2750_v1, %v2336_v62  ;;  %v2256_v46 = vld [vmem:[%s4174_s5 + $0x48] sm:$0xf]  ;;  %v2730_v47 = vld [vmem:[%s4174_s5 + $0x54] sm:$0xf0]  ;;  %v2245_v62 = vor.u32 %v2724_v17, %v2242_v58  ;;  %v2752_v17 = vld [vmem:[%s4174_s5 + $0x10c] sm:$0xf] }
 0x123   :  { %v820_v26 = vadd.f32 %v819_v7, %v807_v22  ;;  %v2748_v7 = vld [vmem:[%s4174_s5 + $0xec] sm:$0xf]  ;;  %v2464_v1 = vld [vmem:[%s4174_s5 + $0x1e8] sm:$0xf]  ;;  %v2354_v58 = vld [vmem:[%s4174_s5 + $0x118] sm:$0xf0] }
 0x124   :  { %v782_v30 = vpop.f32.mrf.mxu3  ;;  %v821_v31 = vpop.f32.mrf.mxu2  ;;  %v2341_v20 = vor.u32 %v2748_v7, %v2338_v8  ;;  %v2744_v22 = vld [vmem:[%s4174_s5 + $0xcc] sm:$0xf] }
 0x125   :  { %v928_v34 = vmax.f32 %v820_v26, 0.0  ;;  %v871_v38 = vpop.f32.mrf.mxu1  ;;  %v2742_v26 = vld [vmem:[%s4174_s5 + $0xb4] sm:$0xf0]  ;;  %v2720_v8 = vld [vmem:[%s4174_s5 + $0xc] sm:$0xf] }
 0x126   :  { %1682 = vmatpush.bf16.msra.mxu3 %v2529_v23  ;;  %1607 = vmatpush.bf16.msrb.mxu2 %v2221_v9  ;;  %v2322_v23 = vld [vmem:[%s4174_s5 + $0xd8] sm:$0xf0]  ;;  %v2305_v30 = vor.u32 %v2742_v26, %v2304_v25  ;;  %v2432_v25 = vld [vmem:[%s4174_s5 + $0x1a8] sm:$0xf]  ;;  %v2774_v26 = vld [vmem:[%s4174_s5 + $0x1b4] sm:$0xf0] }
 0x127   :  { %v3848_v36 = vpack.c.bf16 %v928_v34, %v928_v34  ;;  %v2325_v27 = vor.u32 %v2744_v22, %v2322_v23  ;;  %v2309_v34 = vor.u32 %v2740_v28, %v2306_v29  ;;  %v2226_v9 = vld [vmem:[%s4174_s5 + $0x18] sm:$0xf0]  ;;  %v2776_v22 = vld [vmem:[%s4174_s5 + $0x1cc] sm:$0xf] }
 0x128   :  { %v858_v37 = vpop.f32.mrf.mxu0  ;;  %v2450_v23 = vld [vmem:[%s4174_s5 + $0x1d8] sm:$0xf0]  ;;  %v2772_v28 = vld [vmem:[%s4174_s5 + $0x1ac] sm:$0xf] }
 0x129   :  { %1569 = vmatmul.bf16.vlgmr.msra.gmra.mxu0 %v3848_v36  ;;  %1621 = vmatmul.bf16.vlgmr.msrb.gmra.mxu3 %v3848_v36  ;;  %v2434_v29 = vld [vmem:[%s4174_s5 + $0x1b8] sm:$0xf0] }
 0x12a   :  { %1683 = vmatpush.bf16.msra.mxu3 %v2513_v35  ;;  %1698 = vmatpush.bf16.msra.mxu0 %v2609_v18  ;;  %v2290_v18 = vld [vmem:[%s4174_s5 + $0x98] sm:$0xf0] }
 0x12b   :  { %v2293_v41 = vor.u32 %v2736_v16, %v2290_v18  ;;  %v2400_v18 = vld [vmem:[%s4174_s5 + $0x168] sm:$0xf] }
 0x12c   :  { %v832_v50 = vpop.f32.mrf.mxu3  ;;  %v845_v51 = vpop.f32.mrf.mxu2 }
 0x12d   :  { %v833_v53 = vadd.f32 %v832_v50, %v209_v44  ;;  %v873_v15 = vpop.f32.mrf.mxu1  ;;  %v210_v44 = vperm.slane %v3688_v57, 3  ;;  %v2258_v50 = vld [vmem:[%s4174_s5 + $0x58] sm:$0xf0] }
 0x12e   :  { %1684 = vmatpush.bf16.msra.mxu3 %v2497_v45 }
 0x12f   :  { %v846_v55 = vadd.f32 %v845_v51, %v833_v53  ;;  %v2257_v53 = vor.u32 %v2730_v47, %v2256_v46  ;;  %v2760_v46 = vld [vmem:[%s4174_s5 + $0x14c] sm:$0xf]  ;;  %v2386_v47 = vld [vmem:[%s4174_s5 + $0x158] sm:$0xf0] }
 0x130   :  { %v860_v56 = vpop.f32.mrf.mxu0 }
 0x131   :  { %v859_v60 = vadd.f32 %v858_v37, %v846_v55  ;;  %v2289_v37 = vor.u32 %v2738_v33, %v2288_v32  ;;  %v2726_v55 = vld [vmem:[%s4174_s5 + $0x34] sm:$0xf0]  ;;  %v2261_v56 = vor.u32 %v2728_v49, %v2258_v50  ;;  %v2437_v33 = vor.u32 %v2772_v28, %v2434_v29  ;;  %v2368_v49 = vld [vmem:[%s4174_s5 + $0x128] sm:$0xf] }
 0x132   :  { %1685 = vmatpush.bf16.msra.mxu3 %v2481_v54  ;;  %v2240_v54 = vld [vmem:[%s4174_s5 + $0x28] sm:$0xf]  ;;  %v2770_v32 = vld [vmem:[%s4174_s5 + $0x194] sm:$0xf0] }
 0x133   :  { %v872_v0 = vadd.f32 %v871_v38, %v859_v60  ;;  %v2272_v38 = vld [vmem:[%s4174_s5 + $0x68] sm:$0xf]  ;;  %v2241_v60 = vor.u32 %v2726_v55, %v2240_v54  ;;  %v2758_v50 = vld [vmem:[%s4174_s5 + $0x134] sm:$0xf0] }
 0x134   :  { %v834_v5 = vpop.f32.mrf.mxu3  ;;  %v847_v6 = vpop.f32.mrf.mxu2  ;;  %v2273_v45 = vor.u32 %v2734_v40, %v2272_v38  ;;  %v2764_v40 = vld [vmem:[%s4174_s5 + $0x16c] sm:$0xf]  ;;  %v2754_v54 = vld [vmem:[%s4174_s5 + $0x114] sm:$0xf0] }
 0x135   :  { %v929_v10 = vmax.f32 %v872_v0, 0.0  ;;  %v2722_v0 = vld [vmem:[%s4174_s5 + $0x14] sm:$0xf0]  ;;  %v2466_v5 = vld [vmem:[%s4174_s5 + $0x1f8] sm:$0xf0] }
 0x136   :  { %1750 = vmatpush.bf16.msrb.mxu3 %v2613_v2  ;;  %v2782_v2 = vld [vmem:[%s4174_s5 + $0x1f4] sm:$0xf0] }
 0x137   :  { %v3904_v12 = vpack.c.bf16 %v929_v10, %v929_v10  ;;  %v2225_v10 = vor.u32 %v2722_v0, %v2224_v61  ;;  %v2357_v61 = vor.u32 %v2752_v17, %v2354_v58 }
 0x138   :  { %v3906_v13 = vpop.f32.mrf.mxu0  ;;  %v897_v21 = vpop.f32.mrf.mxu1 }
 0x139   :  { %1582 = vmatmul.bf16.vlgmr.msra.gmra.mxu1 %v3904_v12  ;;  %1634 = vmatmul.bf16.vlgmr.msrb.gmra.mxu0 %v3904_v12 }
 0x13a   :  { %1652 = vmatpush.bf16.msra.mxu1 %v2337_v11  ;;  %1686 = vmatmul.bf16.vlgmr.msra.gmra.mxu3 %v3904_v12  ;;  %v2465_v11 = vor.u32 %v2782_v2, %v2464_v1  ;;  %v2804_v1 = vld [vmem:[%s4174_s5 + $0x2ac] sm:$0xf]  ;;  %v2562_v2 = vld [vmem:[%s4174_s5 + $0x2b8] sm:$0xf0] }
 0x13b   :  { %1704 = vmatpush.bf16.msrb.mxu0 %v2341_v20  ;;  %v2469_v20 = vor.u32 %v2780_v4, %v2466_v5  ;;  %v2800_v4 = vld [vmem:[%s4174_s5 + $0x28c] sm:$0xf]  ;;  %v2546_v5 = vld [vmem:[%s4174_s5 + $0x298] sm:$0xf0] }
 0x13e   :  { %1653 = vmatpush.bf16.msra.mxu1 %v2321_v24  ;;  %v2449_v24 = vor.u32 %v2778_v19, %v2448_v14  ;;  %v2498_v14 = vld [vmem:[%s4174_s5 + $0x238] sm:$0xf0] }
 0x13f   :  { %1705 = vmatpush.bf16.msrb.mxu0 %v2325_v27  ;;  %v2453_v27 = vor.u32 %v2776_v22, %v2450_v23 }
 0x140   :  { %v925_v31 = vpop.f32.mrf.mxu0  ;;  %v899_v35 = vpop.f32.mrf.mxu1 }
 0x141   :  { %v2416_v31 = vld [vmem:[%s4174_s5 + $0x188] sm:$0xf]  ;;  %v2418_v35 = vld [vmem:[%s4174_s5 + $0x198] sm:$0xf0] }
 0x142   :  { %1654 = vmatpush.bf16.msra.mxu1 %v2305_v30  ;;  %v2433_v30 = vor.u32 %v2774_v26, %v2432_v25  ;;  %v2417_v16 = vor.u32 %v2770_v32, %v2416_v31 }
 0x143   :  { %1706 = vmatpush.bf16.msrb.mxu0 %v2309_v34  ;;  %v2768_v34 = vld [vmem:[%s4174_s5 + $0x18c] sm:$0xf] }
 0x144   :  { %v2421_v38 = vor.u32 %v2768_v34, %v2418_v35 }
 0x146   :  { %1655 = vmatpush.bf16.msra.mxu1 %v2289_v37  ;;  %v2766_v37 = vld [vmem:[%s4174_s5 + $0x174] sm:$0xf0] }
 0x147   :  { %1707 = vmatpush.bf16.msrb.mxu0 %v2293_v41  ;;  %v2402_v41 = vld [vmem:[%s4174_s5 + $0x178] sm:$0xf0]  ;;  %v2401_v42 = vor.u32 %v2766_v37, %v2400_v18 }
 0x14a   :  { %1656 = vmatpush.bf16.msra.mxu1 %v2273_v45  ;;  %v2405_v45 = vor.u32 %v2764_v40, %v2402_v41 }
 0x14b   :  { %1708 = vmatpush.bf16.msrb.mxu0 %v2277_v48 }
 0x14c   :  { %v884_v57 = vpop.f32.mrf.mxu3  ;;  %v910_v52 = vpop.f32.mrf.mxu2 }
 0x14d   :  { %v885_v51 = vadd.f32 %v884_v57, %v210_v44  ;;  %v2762_v44 = vld [vmem:[%s4174_s5 + $0x154] sm:$0xf0]  ;;  %v2389_v57 = vor.u32 %v2760_v46, %v2386_v47 }
 0x14e   :  { %1657 = vmatpush.bf16.msra.mxu1 %v2257_v53  ;;  %v2385_v48 = vor.u32 %v2762_v44, %v2384_v43  ;;  %v2352_v53 = vld [vmem:[%s4174_s5 + $0x108] sm:$0xf] }
 0x14f   :  { %v898_v15 = vadd.f32 %v897_v21, %v885_v51  ;;  %1709 = vmatpush.bf16.msrb.mxu0 %v2261_v56  ;;  %v2229_v21 = vor.u32 %v2720_v8, %v2226_v9  ;;  %v2756_v51 = vld [vmem:[%s4174_s5 + $0x12c] sm:$0xf] }
 0x150   :  { %v2812_v56 = vld [vmem:[%s4174_s5 + $0x2ec] sm:$0xf] }
 0x151   :  { %v911_v59 = vadd.f32 %v910_v52, %v898_v15  ;;  %v2370_v52 = vld [vmem:[%s4174_s5 + $0x138] sm:$0xf0]  ;;  %v2792_v9 = vld [vmem:[%s4174_s5 + $0x24c] sm:$0xf] }
 0x152   :  { %1658 = vmatpush.bf16.msra.mxu1 %v2241_v60  ;;  %v2373_v55 = vor.u32 %v2756_v51, %v2370_v52  ;;  %v2594_v15 = vld [vmem:[%s4174_s5 + $0x2f8] sm:$0xf0] }
 0x153   :  { %v924_v63 = vadd.f32 %v3906_v13, %v911_v59  ;;  %1710 = vmatpush.bf16.msrb.mxu0 %v2245_v62  ;;  %v2353_v59 = vor.u32 %v2754_v54, %v2352_v53  ;;  %v2597_v60 = vor.u32 %v2812_v56, %v2594_v15  ;;  %v2808_v62 = vld [vmem:[%s4174_s5 + $0x2cc] sm:$0xf]  ;;  %v1760_v53 = vld [vmem:[%s4177_s7] sm:$0xf] }
 0x154   :  { %v886_v3 = vpop.f32.mrf.mxu3  ;;  %v912_v7 = vpop.f32.mrf.mxu2  ;;  %v1762_v15 = vperm.slane %v1760_v53, 0  ;;  %v1763_v58 = vperm.slane %v1760_v53, 1 }
 0x155   :  { %v930_v6 = vmax.f32 %v924_v63, 0.0  ;;  %v2578_v63 = vld [vmem:[%s4174_s5 + $0x2d8] sm:$0xf0]  ;;  %v2565_v3 = vor.u32 %v2804_v1, %v2562_v2  ;;  %v2796_v7 = vld [vmem:[%s4174_s5 + $0x26c] sm:$0xf] }
 0x156   :  { %1659 = vmatpush.bf16.msra.mxu1 %v2225_v10  ;;  %v2581_v0 = vor.u32 %v2808_v62, %v2578_v63  ;;  %v2514_v10 = vld [vmem:[%s4174_s5 + $0x258] sm:$0xf0] }
 0x157   :  { %v934_v13 = vpack.c.bf16 %v930_v6, %v930_v6  ;;  %1711 = vmatpush.bf16.msrb.mxu0 %v2229_v21  ;;  %v2549_v6 = vor.u32 %v2800_v4, %v2546_v5  ;;  %v2482_v21 = vld [vmem:[%s4174_s5 + $0x218] sm:$0xf0] }
 0x159   :  { %2614 = vmatmul.msk.bf16.vlgmr.msra.gmra.mxu2 %vm715_vm0, %v934_v13  ;;  %2615 = vmatmul.msk.bf16.vlgmr.msrb.gmra.mxu1 %vm715_vm0, %v934_v13 }
 0x15a   :  { %1665 = vmatpush.bf16.msra.mxu2 %v2465_v11  ;;  %2616 = vmatmul.msk.bf16.vlgmr.msra.gmra.mxu0 %vm715_vm0, %v934_v13  ;;  %v2517_v11 = vor.u32 %v2792_v9, %v2514_v10 }
 0x15b   :  { %2617 = vmatmul.msk.bf16.vlgmr.msrb.gmra.mxu3 %vm715_vm0, %v934_v13  ;;  %1717 = vmatpush.bf16.msrb.mxu1 %v2469_v20  ;;  %v2788_v13 = vld [vmem:[%s4174_s5 + $0x22c] sm:$0xf] }
 0x15c   :  { %v2501_v19 = vor.u32 %v2788_v13, %v2498_v14  ;;  %v2784_v20 = vld [vmem:[%s4174_s5 + $0x20c] sm:$0xf] }
 0x15d   :  { %v2485_v22 = vor.u32 %v2784_v20, %v2482_v21 }
 0x15e   :  { %1666 = vmatpush.bf16.msra.mxu2 %v2449_v24  ;;  %v4154_v24 = vld [vmem:[%s4176_s6] sm:$0xf] }
 0x15f   :  { %1718 = vmatpush.bf16.msrb.mxu1 %v2453_v27  ;;  %v1037_v26 = vperm.slane %v4154_v24, 0  ;;  %v1039_v62 = vperm.slane %v4154_v24, 2  ;;  %v1040_v14 = vperm.slane %v4154_v24, 3 }
 0x162   :  { %1667 = vmatpush.bf16.msra.mxu2 %v2433_v30 }
 0x163   :  { %1719 = vmatpush.bf16.msrb.mxu1 %v2437_v33 }
 0x166   :  { %1668 = vmatpush.bf16.msra.mxu2 %v2417_v16 }
 0x167   :  { %1720 = vmatpush.bf16.msrb.mxu1 %v2421_v38 }
 0x169   :  { %1608 = vmatmul.bf16.vlgmr.msrb.gmra.mxu2 %v3757_v39  ;;  %1660 = vmatmul.bf16.vlgmr.msra.gmra.mxu1 %v3757_v39 }
 0x16a   :  { %1669 = vmatpush.bf16.msra.mxu2 %v2401_v42  ;;  %1712 = vmatmul.bf16.vlgmr.msrb.gmra.mxu0 %v3757_v39  ;;  %v2369_v39 = vor.u32 %v2758_v50, %v2368_v49  ;;  %v1038_v49 = vperm.slane %v4154_v24, 1 }
 0x16b   :  { %1721 = vmatpush.bf16.msrb.mxu1 %v2405_v45 }
 0x16e   :  { %1670 = vmatpush.bf16.msra.mxu2 %v2385_v48 }
 0x16f   :  { %1722 = vmatpush.bf16.msrb.mxu1 %v2389_v57 }
 0x172   :  { %1671 = vmatpush.bf16.msra.mxu2 %v2369_v39 }
 0x173   :  { %1723 = vmatpush.bf16.msrb.mxu1 %v2373_v55 }
 0x176   :  { %1672 = vmatpush.bf16.msra.mxu2 %v2353_v59 }
 0x177   :  { %1724 = vmatpush.bf16.msrb.mxu1 %v2357_v61 }
 0x179   :  { %1673 = vmatmul.bf16.vlgmr.msra.gmra.mxu2 %v3848_v36 }
 0x17a   :  { %1730 = vmatpush.bf16.msrb.mxu2 %v2597_v60  ;;  %1725 = vmatmul.bf16.vlgmr.msrb.gmra.mxu1 %v3848_v36  ;;  %v2530_v36 = vld [vmem:[%s4174_s5 + $0x278] sm:$0xf0] }
 0x17b   :  { %v2533_v8 = vor.u32 %v2796_v7, %v2530_v36  ;;  %v1764_v36 = vperm.slane %v1760_v53, 2 }
 0x17e   :  { %1731 = vmatpush.bf16.msrb.mxu2 %v2581_v0 }
 0x182   :  { %1732 = vmatpush.bf16.msrb.mxu2 %v2565_v3 }
 0x186   :  { %1733 = vmatpush.bf16.msrb.mxu2 %v2549_v6 }
 0x18a   :  { %1734 = vmatpush.bf16.msrb.mxu2 %v2533_v8 }
 0x18e   :  { %1735 = vmatpush.bf16.msrb.mxu2 %v2517_v11  ;;  %v14_v11 = vstv %s4178_s8 }
 0x18f   :  { %15 = vst [vmem:[#allocation2] sm:$0x1] %v14_v11 }
 0x192   :  { %1736 = vmatpush.bf16.msrb.mxu2 %v2501_v19 }
 0x196   :  { %1737 = vmatpush.bf16.msrb.mxu2 %v2485_v22 }
 0x198   :  { %v1557_v23 = vpop.f32.mrf.mxu3 }
 0x199   :  { %1738 = vmatmul.bf16.vlgmr.msrb.gmra.mxu2 %v3904_v12  ;;  %v1558_v27 = vadd.f32 %v1557_v23, %v1037_v26 }
 0x1a0   :  { %v1559_v25 = vpop.f32.mrf.mxu3 }
 0x1a1   :  { %v1765_v25 = vperm.slane %v1760_v53, 3 }
 0x1a6   :  { %v1570_v28 = vpop.f32.mrf.mxu0 }
 0x1a7   :  { %v1571_v29 = vadd.f32 %v1570_v28, %v1558_v27 }
 0x1ac   :  { %v1622_v30 = vpop.f32.mrf.mxu3 }
 0x1ae   :  { %v1572_v31 = vpop.f32.mrf.mxu0 }
 0x1af   :  { %v2823_v31 = vld [vmem:[#allocation2] ss:$0 sm:$0xff] }
 0x1b4   :  { %v1624_v32 = vpop.f32.mrf.mxu3 }
 0x1b6   :  { %v1583_v33 = vpop.f32.mrf.mxu1  ;;  %v1635_v34 = vpop.f32.mrf.mxu0 }
 0x1b7   :  { %v1584_v35 = vadd.f32 %v1583_v33, %v1571_v29 }
 0x1bd   :  { %v1687_v16 = vpop.f32.mrf.mxu3 }
 0x1be   :  { %v1585_v12 = vpop.f32.mrf.mxu1  ;;  %v1637_v18 = vpop.f32.mrf.mxu0 }
 0x1c5   :  { %v1689_v37 = vpop.f32.mrf.mxu3 }
 0x1d6   :  { %v1648_v38 = vpop.f32.mrf.mxu1 }
 0x1d7   :  { %v1700_v40 = vpop.f32.mrf.mxu0 }
 0x1dc   :  { %v1596_v41 = vpop.f32.mrf.mxu2 }
 0x1dd   :  { %v1597_v52 = vadd.f32 %v1596_v41, %v1584_v35 }
 0x1de   :  { %v1752_v42 = vpop.f32.mrf.mxu3  ;;  %v1650_v43 = vpop.f32.mrf.mxu1 }
 0x1df   :  { %v1702_v44 = vpop.f32.mrf.mxu0  ;;  %v1756_v56 = vmax.f32 %v1597_v52, 0.0 }
 0x1e1   :  { %v1770_v61 = vmul.f32 %v1762_v15, %v1756_v56 }
 0x1e4   :  { %v1598_v45 = vpop.f32.mrf.mxu2 }
 0x1e6   :  { %v1754_v46 = vpop.f32.mrf.mxu3  ;;  %v1661_v47 = vpop.f32.mrf.mxu1 }
 0x1e7   :  { %v1713_v48 = vpop.f32.mrf.mxu0  ;;  %v1662_v2 = vadd.f32 %v1661_v47, %v1039_v62 }
 0x1e8   :  { %v1714_v19 = vadd.f32 %v1713_v48, %v1040_v14 }
 0x1ec   :  { %v1609_v50 = vpop.f32.mrf.mxu2 }
 0x1ed   :  { %v1610_v57 = vadd.f32 %v1609_v50, %v1038_v49 }
 0x1ee   :  { %v1663_v51 = vpop.f32.mrf.mxu1 }
 0x1ef   :  { %v1623_v39 = vadd.f32 %v1622_v30, %v1610_v57  ;;  %v1715_v54 = vpop.f32.mrf.mxu0 }
 0x1f1   :  { %v1636_v55 = vadd.f32 %v1635_v34, %v1623_v39 }
 0x1f3   :  { %v1649_v17 = vadd.f32 %v1648_v38, %v1636_v55 }
 0x1f4   :  { %v1611_v59 = vpop.f32.mrf.mxu2 }
 0x1f5   :  { %v1757_v60 = vmax.f32 %v1649_v17, 0.0 }
 0x1f7   :  { %v1771_v63 = vmul.f32 %v1763_v58, %v1757_v60  ;;  %v1726_v0 = vpop.f32.mrf.mxu1 }
 0x1f8   :  { %v1727_v20 = vadd.f32 %v1726_v0, %v1714_v19 }
 0x1f9   :  { %v1774_v1 = vadd.f32 %v1771_v63, %v1770_v61 }
 0x1fc   :  { %v1674_v3 = vpop.f32.mrf.mxu2 }
 0x1fd   :  { %v1675_v4 = vadd.f32 %v1674_v3, %v1662_v2 }
 0x1ff   :  { %v1688_v5 = vadd.f32 %v1687_v16, %v1675_v4  ;;  %v1728_v6 = vpop.f32.mrf.mxu1 }
 0x201   :  { %v1701_v7 = vadd.f32 %v1700_v40, %v1688_v5 }
 0x203   :  { %v1758_v8 = vmax.f32 %v1701_v7, 0.0 }
 0x204   :  { %v1676_v9 = vpop.f32.mrf.mxu2 }
 0x205   :  { %v1772_v10 = vmul.f32 %v1764_v36, %v1758_v8 }
 0x207   :  { %v1775_v13 = vadd.f32 %v1774_v1, %v1772_v10 }
 0x21c   :  { %v1739_v21 = vpop.f32.mrf.mxu2 }
 0x21d   :  { %v1740_v22 = vadd.f32 %v1739_v21, %v1727_v20 }
 0x21f   :  { %v1753_v23 = vadd.f32 %v1752_v42, %v1740_v22 }
 0x221   :  { %v1759_v26 = vmax.f32 %v1753_v23, 0.0 }
 0x223   :  { %v1773_v27 = vmul.f32 %v1765_v25, %v1759_v26 }
 0x224   :  { %v1741_v28 = vpop.f32.mrf.mxu2 }
 0x225   :  { %v1776_v29 = vsel %vm715_vm0, %v1773_v27, 0.0 }
 0x226   :  { %v1777_v30 = vadd.f32 %v1776_v29, %v1775_v13 }
 0x228   :  { %1778 = vadd.xlane.f32.xlu1 %v1777_v30 }
 0x29b   :  { %v1779_v32 = vpop.xlane.xlu1 %1778 }
 0x29c   :  { %v1784_v33 = vadd.f32 %v2823_v31, %v1779_v32 }
 0x29e   :  { %v2618_v34 = vmul.f32 -1.442695, %v1784_v33 }
 0x2a0   :  { %2824 = vpow2.f32 %v2618_v34 }
 0x2a6   :  { %v2825_v35 = vpop.eup %2824 }
 0x2a7   :  { %v1788_v24 = vadd.f32 1.0, %v2825_v35 }
 0x2a9   :  { %2826 = vrcp.f32 %v1788_v24  ;;  %v1800_v37 = vand.u32 2147483648, %v1788_v24  ;;  %v1798_v40 = vand.u32 2147483647, %v1788_v24  ;;  %vm1794_vm2 = vweird.f32 %v1788_v24 }
 0x2ab   :  { %v1801_v42 = vor.u32 1.1754944e-38, %v1800_v37  ;;  %vm1799_vm5 = vcmp.eq.f32.partialorder %v1798_v40, 8.507059e+37 }
 0x2af   :  { %v2827_v16 = vpop.eup %2826 }
 0x2b0   :  { %v1790_v12 = vmul.f32 %v2827_v16, %v1788_v24  ;;  %vm1795_vm1 = vweird.f32 %v2827_v16 }
 0x2b1   :  { %vm1796_vm4 = vmor %vm1794_vm2, %vm1795_vm1 }
 0x2b2   :  { %v1791_v18 = vsub.f32 1.0, %v1790_v12 }
 0x2b4   :  { %v1792_v38 = vmul.f32 %v2827_v16, %v1791_v18 }
 0x2b6   :  { %v1793_v41 = vadd.f32 %v2827_v16, %v1792_v38 }
 0x2b8   :  { %v1797_v43 = vsel %vm1796_vm4, %v2827_v16, %v1793_v41 }
 0x2b9   :  { %v1802_v44 = vsel %vm1799_vm5, %v1801_v42, %v1797_v43 }
 0x2ba   :  { %1805 = vst.msk [vmem:[%s4179_s9] sm:$0xff] %vm1804_vm3, %v1802_v44 }

</bundles_post_ra>
